<compile_context>
chip_gen: v5e
topology: v5e:2x2
jax: 0.10.0
libtpu: 0.0.40
codegen_flags: <defaults>
</compile_context>

<pallas_src>
import functools

import jax
import jax.numpy as jnp
from jax import lax
from jax.experimental import pallas as pl
from jax.experimental.pallas import tpu as pltpu


def _round_up(x, m):
    return ((x + m - 1) // m) * m


def _vmem_budget_bytes():
    """~75% of physical VMEM (generation-aware); conservative v7x fallback."""
    cap = 64 * 2 ** 20
    try:
        info = pltpu.get_tpu_info()
        cap_attr = getattr(info, "vmem_capacity_bytes", None)
        if cap_attr:
            cap = int(cap_attr)
    except Exception:
        pass
    return int(cap * 0.75)


def _estimate_vmem(b_blk, n_p, din_p, a_p, o_p, kb, cbytes):
    """Layout-aware working-set estimate (bytes) for one grid step."""
    f32 = 4
    lane = lambda d: _round_up(d, 128)                 # lane padding of last dim
    est = 0
    est += 2 * b_blk * n_p * lane(din_p) * f32         # x block (double buffered)
    est += b_blk * n_p * 3 * a_p * f32                 # fused qkv (f32 accumulation)
    est += b_blk * n_p * a_p * (2 * cbytes + f32)      # q, k (compute dtype) + v (f32)
    est += 2 * b_blk * n_p * kb * f32                  # scores + exp blocks live together
    est += b_blk * n_p * a_p * f32                     # w*v product before sublane reduce
    est += 2 * (din_p * 3 * a_p + a_p * o_p) * cbytes  # weights (double buffered)
    est += 2 * (3 * a_p + o_p) * f32                   # biases
    est += 2 * b_blk * o_p * f32                       # output block
    return est


def _choose_config(B, N, din_p, a_p, o_p, budget, batch_block, key_block, cbytes):
    """Pick (batch_block, key_block_or_None) that fits the VMEM budget."""
    b_top = _round_up(B, 8)
    if batch_block is not None:
        cands = [max(8, _round_up(batch_block, 8))]
    else:
        top = min(b_top, 128)
        if b_top >= 16:                     # keep >=2 grid steps (v7x has 2 TCs)
            top = min(top, _round_up(b_top // 2, 8))
        cands = list(range(top, 7, -8)) or [8]

    if key_block is None:
        for bb in cands:                    # full-scores path if it fits
            if _estimate_vmem(bb, N, din_p, a_p, o_p, N, cbytes) <= budget:
                return bb, None
        kb_opts = [512, 256, 128]
    else:
        kb_opts = [max(128, _round_up(key_block, 128))]

    for bb in cands:                        # flash-style key-tiled path
        for kb in kb_opts:
            n_p = _round_up(N, kb)
            if _estimate_vmem(bb, n_p, din_p, a_p, o_p, kb, cbytes) <= budget:
                return bb, kb
    return cands[-1], kb_opts[-1]           # best effort (smallest blocks)


def _project_qkv(x_ref, wqkv_ref, bqkv_ref, compute_dtype):
    """Fused Q/K/V projection: one MXU matmul + one bias add."""
    bb, n, dp = x_ref.shape
    a3 = wqkv_ref.shape[1]
    a_p = a3 // 3
    # Leading-dims-only reshape (lane dim unchanged) -> free retile in VMEM.
    x = x_ref[...].reshape(bb * n, dp).astype(compute_dtype)
    qkv = jnp.dot(x, wqkv_ref[...], preferred_element_type=jnp.float32)
    qkv = qkv.reshape(bb, n, a3) + bqkv_ref[...]
    q = qkv[:, :, :a_p].astype(compute_dtype)
    k = qkv[:, :, a_p:2 * a_p].astype(compute_dtype)
    v = qkv[:, :, 2 * a_p:]                 # stays f32 (only used on the VPU path)
    return q, k, v


def _encoder_kernel_full(x_ref, wqkv_ref, bqkv_ref, wo_ref, bo_ref, out_ref, *,
                         compute_dtype):
    """Single-pass path: the full (b_blk, N, N) scores block fits in VMEM."""
    bb, n, _ = x_ref.shape
    q, k, v = _project_qkv(x_ref, wqkv_ref, bqkv_ref, compute_dtype)

    # Raw (unscaled) attention logits; numerically stable softmax.
    s = jnp.einsum("bqd,bkd->bqk", q, k, preferred_element_type=jnp.float32)
    m = jnp.max(s, axis=-1, keepdims=True)
    e = jnp.exp(s - m)                                             # (bb, n, n)
    l = jnp.sum(e, axis=-1)                                        # (bb, n)

    # Mean-pool folded into attention:
    #   mean_q (softmax(s) @ v)[q]  ==  ((1/N) * sum_q softmax(s)[q, :]) @ v
    # Column sums of normalized probabilities on the MXU (O(N^2) work):
    inv_l = (1.0 / l) * (1.0 / n)                                  # exact, O(N)
    w = jnp.einsum("buq,bqk->buk", inv_l[:, None, :], e,
                   preferred_element_type=jnp.float32)[:, 0, :]    # (bb, n)
    # Tiny O(N*A) contraction with v on the VPU (M=1 MXU matvec is fill/drain bound).
    pooled = jnp.sum(w[:, :, None] * v, axis=1)                    # (bb, a_p) f32

    out = jnp.dot(pooled.astype(compute_dtype), wo_ref[...],
                  preferred_element_type=jnp.float32) + bo_ref[...]
    out_ref[...] = out.astype(out_ref.dtype)


def _encoder_kernel_tiled(x_ref, wqkv_ref, bqkv_ref, wo_ref, bo_ref, out_ref,
                          k_scr, v_scr, *, compute_dtype, key_block, n_real):
    """Two-pass online-softmax path: only (b_blk, N, key_block) scores live."""
    bb, n_p, _ = x_ref.shape
    a_p = wo_ref.shape[0]
    nkb = n_p // key_block
    needs_mask = (n_real != n_p)

    q, k, v = _project_qkv(x_ref, wqkv_ref, bqkv_ref, compute_dtype)
    k_scr[...] = k
    v_scr[...] = v

    key_iota = lax.broadcasted_iota(jnp.int32, (1, key_block), 1)  # (1, kb)

    def scores_block(i):
        start = pl.multiple_of(i * key_block, key_block)
        kb_tile = k_scr[:, pl.ds(start, key_block), :]
        s = jnp.einsum("bqd,bkd->bqk", q, kb_tile,
                       preferred_element_type=jnp.float32)         # (bb, n_p, kb)
        if needs_mask:
            valid = (key_iota + i * key_block) < n_real            # (1, kb)
            s = jnp.where(valid[None], s, -jnp.inf)
        return s, start

    # Pass 1: per-query running max / denominator (online softmax statistics).
    def pass1(i, carry):
        m, l = carry
        s, _ = scores_block(i)
        m_new = jnp.maximum(m, jnp.max(s, axis=-1))                # (bb, n_p)
        p = jnp.exp(s - m_new[:, :, None])
        l_new = l * jnp.exp(m - m_new) + jnp.sum(p, axis=-1)
        return m_new, l_new

    m0 = jnp.full((bb, n_p), -jnp.inf, jnp.float32)
    l0 = jnp.zeros((bb, n_p), jnp.float32)
    m, l = lax.fori_loop(0, nkb, pass1, (m0, l0))

    inv_l = (1.0 / l) * (1.0 / n_real)                             # (bb, n_p)
    if needs_mask:
        q_iota = lax.broadcasted_iota(jnp.int32, (1, n_p), 1)
        inv_l = jnp.where(q_iota < n_real, inv_l, 0.0)             # drop padded queries

    # Pass 2: column sums of normalized probabilities (MXU), contracted with v (VPU).
    def pass2(i, pooled):
        s, start = scores_block(i)
        e = jnp.exp(s - m[:, :, None])
        w = jnp.einsum("buq,bqk->buk", inv_l[:, None, :], e,
                       preferred_element_type=jnp.float32)[:, 0, :]  # (bb, kb)
        vb = v_scr[:, pl.ds(start, key_block), :]
        return pooled + jnp.sum(w[:, :, None] * vb, axis=1)

    pooled = lax.fori_loop(0, nkb, pass2, jnp.zeros((bb, a_p), jnp.float32))

    out = jnp.dot(pooled.astype(compute_dtype), wo_ref[...],
                  preferred_element_type=jnp.float32) + bo_ref[...]
    out_ref[...] = out.astype(out_ref.dtype)


def point_sa_encoder(x, params, *, batch_block=None, key_block=None,
                     compute_dtype=jnp.bfloat16):
    """x: (B, N, input_dim) float32.  params: dict of unfused Linear weights/biases."""
    B, N, Din = x.shape
    A = params["wq"].shape[1]
    O = params["wo"].shape[1]

    Din_p = _round_up(Din, 8)
    A_p = _round_up(A, 128)                 # lane-dense attention dim
    O_p = _round_up(O, 128)                 # lane-dense output stores
    cbytes = jnp.dtype(compute_dtype).itemsize

    budget = _vmem_budget_bytes()
    b_blk, kb = _choose_config(B, N, Din_p, A_p, O_p, budget,
                               batch_block, key_block, cbytes)
    tiled = kb is not None
    N_p = _round_up(N, kb) if tiled else N
    B_p = _round_up(B, b_blk)

    # Zero padding is mathematically inert (padded keys/queries are masked in
    # the tiled path; the full path never pads N).
    x_p = jnp.pad(x, ((0, B_p - B), (0, N_p - N), (0, Din_p - Din)))

    def pad_w(w, r, c):
        return jnp.pad(w, ((0, r - w.shape[0]), (0, c - w.shape[1])))

    # Fused QKV weights, pre-cast once to the MXU compute dtype (grid-invariant).
    wqkv = jnp.concatenate([pad_w(params["wq"], Din_p, A_p),
                            pad_w(params["wk"], Din_p, A_p),
                            pad_w(params["wv"], Din_p, A_p)],
                           axis=1).astype(compute_dtype)
    bqkv = jnp.concatenate([pad_w(params["bq"], 1, A_p),
                            pad_w(params["bk"], 1, A_p),
                            pad_w(params["bv"], 1, A_p)], axis=1).astype(jnp.float32)
    wo = pad_w(params["wo"], A_p, O_p).astype(compute_dtype)
    bo = pad_w(params["bo"], 1, O_p).astype(jnp.float32)

    in_specs = [
        # x block spans the full (N_p, Din_p) trailing dims -> contiguous HBM DMA.
        pl.BlockSpec((b_blk, N_p, Din_p), lambda b: (b, 0, 0)),
        # TODO(synk): pipeline_mode=pl.Buffered(1) on these grid-invariant weight
        # blocks would drop their second VMEM buffer (only matters at large dims).
        pl.BlockSpec((Din_p, 3 * A_p), lambda b: (0, 0)),
        pl.BlockSpec((1, 3 * A_p), lambda b: (0, 0)),
        pl.BlockSpec((A_p, O_p), lambda b: (0, 0)),
        pl.BlockSpec((1, O_p), lambda b: (0, 0)),
    ]
    out_spec = pl.BlockSpec((b_blk, O_p), lambda b: (b, 0))

    if tiled:
        kernel = functools.partial(_encoder_kernel_tiled, compute_dtype=compute_dtype,
                                   key_block=kb, n_real=N)
        scratch = [pltpu.VMEM((b_blk, N_p, A_p), compute_dtype),   # k
                   pltpu.VMEM((b_blk, N_p, A_p), jnp.float32)]     # v
    else:
        kernel = functools.partial(_encoder_kernel_full, compute_dtype=compute_dtype)
        scratch = []

    grid_spec = pltpu.PrefetchScalarGridSpec(
        num_scalar_prefetch=0,
        grid=(B_p // b_blk,),
        in_specs=in_specs,
        out_specs=out_spec,
        scratch_shapes=scratch)

    out_p = pl.pallas_call(
        kernel,
        out_shape=jax.ShapeDtypeStruct((B_p, O_p), jnp.float32),
        grid_spec=grid_spec,
        compiler_params=pltpu.CompilerParams(
            # "parallel" shards the batch axis across TensorCores (megacore).
            dimension_semantics=("parallel",),
            vmem_limit_bytes=budget),
    )(x_p, wqkv, bqkv, wo, bo)

    return out_p[:B, :O]


def init_params(key, input_dim, atten_dim, output_dim):
    """Deterministic synthetic init (mimics nn.Linear uniform fan-in init).

    Weights are stored already transposed to (in_features, out_features) so the
    kernel can do `x @ W` directly.
    """
    ks = jax.random.split(key, 8)

    def lin(kw, kb_, fan_in, fan_out):
        bound = 1.0 / jnp.sqrt(fan_in)
        w = jax.random.uniform(kw, (fan_in, fan_out), jnp.float32, -bound, bound)
        b = jax.random.uniform(kb_, (1, fan_out), jnp.float32, -bound, bound)
        return w, b

    wq, bq = lin(ks[0], ks[1], input_dim, atten_dim)
    wk, bk = lin(ks[2], ks[3], input_dim, atten_dim)
    wv, bv = lin(ks[4], ks[5], input_dim, atten_dim)
    wo, bo = lin(ks[6], ks[7], atten_dim, output_dim)
    return dict(wq=wq, bq=bq, wk=wk, bk=bk, wv=wv, bv=bv, wo=wo, bo=bo)


def reference_forward(x, p):
    """Pure-JAX reference of the PyTorch module for correctness checking."""
    q = x @ p["wq"] + p["bq"]
    k = x @ p["wk"] + p["bk"]
    v = x @ p["wv"] + p["bv"]
    scores = jnp.einsum("bnd,bmd->bnm", q, k)
    attn = jax.nn.softmax(scores, axis=-1)
    ao = jnp.einsum("bnm,bmd->bnd", attn, v)
    pooled = jnp.mean(ao, axis=1)
    return pooled @ p["wo"] + p["bo"]


if __name__ == "__main__":
    B, N, input_dim, atten_dim, output_dim = 2, 16, 4, 32, 16

    key = jax.random.PRNGKey(0)
    kx, kp, kx2 = jax.random.split(key, 3)
    x = jax.random.normal(kx, (B, N, input_dim), dtype=jnp.float32)
    params = init_params(kp, input_dim, atten_dim, output_dim)
    ref = reference_forward(x, params)

    # 1) Default path (bf16 MXU compute, full-scores kernel).
    out_bf16 = jax.block_until_ready(point_sa_encoder(x, params))
    assert out_bf16.shape == (B, output_dim)
    assert jnp.allclose(out_bf16, ref, atol=5e-2, rtol=5e-2), "bf16 path mismatch"

    # 2) f32 compute, full-scores kernel (tight tolerance).
    out_f32 = jax.block_until_ready(
        point_sa_encoder(x, params, compute_dtype=jnp.float32))
    assert jnp.allclose(out_f32, ref, atol=2e-3, rtol=2e-3), "f32 path mismatch"

    # 3) Forced flash-style key-tiled path (exercises N padding + masking +
    #    two-pass online softmax) at a non-multiple-of-128 point count.
    N2 = 200
    x2 = jax.random.normal(kx2, (B, N2, input_dim), dtype=jnp.float32)
    ref2 = reference_forward(x2, params)
    out_tiled = jax.block_until_ready(
        point_sa_encoder(x2, params, key_block=128, compute_dtype=jnp.float32))
    assert out_tiled.shape == (B, output_dim)
    assert jnp.allclose(out_tiled, ref2, atol=2e-3, rtol=2e-3), "tiled path mismatch"

    print("KERNEL_OK")
</pallas_src>

<mosaic_0001>
module attributes {stable_mosaic.version = 11 : i64} {
  func.func @_encoder_kernel_full(%arg0: i32, %arg1: memref<8x16x8xf32, #tpu.memory_space<vmem>>, %arg2: memref<8x384xbf16, #tpu.memory_space<vmem>>, %arg3: memref<1x384xf32, #tpu.memory_space<vmem>>, %arg4: memref<128x128xbf16, #tpu.memory_space<vmem>>, %arg5: memref<1x128xf32, #tpu.memory_space<vmem>>, %arg6: memref<8x128xf32, #tpu.memory_space<vmem>>) attributes {dimension_semantics = [#tpu.dimension_semantics<parallel>], iteration_bounds = array<i64: 1>, scalar_prefetch = 0 : i64, scratch_operands = 0 : i64, tpu.core_type = #tpu.core_type<tc>, window_params = [{transform_indices = @transform_0, window_bounds = array<i64: 8, 16, 8>}, {pipeline_mode = #tpu.pipeline_mode<synchronous>, transform_indices = @transform_1, window_bounds = array<i64: 8, 384>}, {pipeline_mode = #tpu.pipeline_mode<synchronous>, transform_indices = @transform_2, window_bounds = array<i64: 1, 384>}, {pipeline_mode = #tpu.pipeline_mode<synchronous>, transform_indices = @transform_3, window_bounds = array<i64: 128, 128>}, {pipeline_mode = #tpu.pipeline_mode<synchronous>, transform_indices = @transform_4, window_bounds = array<i64: 1, 128>}, {transform_indices = @transform_5, window_bounds = array<i64: 8, 128>}]} {
    %c0 = arith.constant 0 : index
    %c0_0 = arith.constant 0 : index
    %c0_1 = arith.constant 0 : index
    %0 = vector.load %arg1[%c0, %c0_0, %c0_1] : memref<8x16x8xf32, #tpu.memory_space<vmem>>, vector<8x16x8xf32>
    %1 = vector.shape_cast %0 : vector<8x16x8xf32> to vector<128x8xf32>
    %2 = arith.truncf %1 : vector<128x8xf32> to vector<128x8xbf16>
    %c0_2 = arith.constant 0 : index
    %c0_3 = arith.constant 0 : index
    %3 = vector.load %arg2[%c0_2, %c0_3] : memref<8x384xbf16, #tpu.memory_space<vmem>>, vector<8x384xbf16>
    %cst = arith.constant dense<0.000000e+00> : vector<128x384xf32>
    %4 = tpu.matmul %2, %3, %cst {dimension_numbers = #tpu.dot_dimension_numbers<[1], [0], [0], [1], [0, 0, 1, 1], [], []>} : vector<128x8xbf16>, vector<8x384xbf16>, vector<128x384xf32> -> vector<128x384xf32>
    %5 = vector.shape_cast %4 : vector<128x384xf32> to vector<8x16x384xf32>
    %c0_4 = arith.constant 0 : index
    %c0_5 = arith.constant 0 : index
    %6 = vector.load %arg3[%c0_4, %c0_5] : memref<1x384xf32, #tpu.memory_space<vmem>>, vector<1x384xf32>
    %7 = vector.shape_cast %6 : vector<1x384xf32> to vector<1x1x384xf32>
    %8 = vector.broadcast %7 : vector<1x1x384xf32> to vector<8x16x384xf32>
    %9 = arith.addf %5, %8 : vector<8x16x384xf32>
    %10 = vector.extract_strided_slice %9 {offsets = [0, 0, 0], sizes = [8, 16, 128], strides = [1, 1, 1]} : vector<8x16x384xf32> to vector<8x16x128xf32>
    %11 = arith.truncf %10 : vector<8x16x128xf32> to vector<8x16x128xbf16>
    %12 = vector.extract_strided_slice %9 {offsets = [0, 0, 128], sizes = [8, 16, 128], strides = [1, 1, 1]} : vector<8x16x384xf32> to vector<8x16x128xf32>
    %13 = arith.truncf %12 : vector<8x16x128xf32> to vector<8x16x128xbf16>
    %14 = vector.extract_strided_slice %9 {offsets = [0, 0, 256], sizes = [8, 16, 128], strides = [1, 1, 1]} : vector<8x16x384xf32> to vector<8x16x128xf32>
    "tpu.trace_start"() <{level = 10 : i32, message = "bqd,bkd->bqk"}> : () -> ()
    %cst_6 = arith.constant dense<0.000000e+00> : vector<8x16x16xf32>
    %15 = tpu.matmul %11, %13, %cst_6 {dimension_numbers = #tpu.dot_dimension_numbers<[2], [2], [1], [1], [0, 0, 0, 1, 1, 1], [0], [0]>} : vector<8x16x128xbf16>, vector<8x16x128xbf16>, vector<8x16x16xf32> -> vector<8x16x16xf32>
    "tpu.trace_stop"() : () -> ()
    %cst_7 = arith.constant dense<0xFF800000> : vector<8x16xf32>
    %16 = vector.multi_reduction <maximumf>, %15, %cst_7 [2] : vector<8x16x16xf32> to vector<8x16xf32>
    %17 = vector.shape_cast %16 : vector<8x16xf32> to vector<8x16x1xf32>
    %18 = vector.broadcast %17 : vector<8x16x1xf32> to vector<8x16x16xf32>
    %19 = arith.subf %15, %18 : vector<8x16x16xf32>
    %20 = math.exp %19 : vector<8x16x16xf32>
    %cst_8 = arith.constant dense<0.000000e+00> : vector<8x16xf32>
    %21 = vector.multi_reduction <add>, %20, %cst_8 [2] : vector<8x16x16xf32> to vector<8x16xf32>
    %cst_9 = arith.constant 1.000000e+00 : f32
    %22 = vector.broadcast %cst_9 : f32 to vector<8x16xf32>
    %23 = arith.divf %22, %21 : vector<8x16xf32>
    %cst_10 = arith.constant 6.250000e-02 : f32
    %24 = vector.broadcast %cst_10 : f32 to vector<8x16xf32>
    %25 = arith.mulf %23, %24 : vector<8x16xf32>
    %26 = vector.shape_cast %25 : vector<8x16xf32> to vector<8x1x16xf32>
    "tpu.trace_start"() <{level = 10 : i32, message = "buq,bqk->buk"}> : () -> ()
    %cst_11 = arith.constant dense<0.000000e+00> : vector<8x1x16xf32>
    %27 = tpu.matmul %26, %20, %cst_11 {dimension_numbers = #tpu.dot_dimension_numbers<[2], [1], [1], [2], [0, 0, 0, 1, 1, 2], [0], [0]>} : vector<8x1x16xf32>, vector<8x16x16xf32>, vector<8x1x16xf32> -> vector<8x1x16xf32>
    "tpu.trace_stop"() : () -> ()
    %28 = vector.shape_cast %27 : vector<8x1x16xf32> to vector<8x16xf32>
    %29 = vector.shape_cast %28 : vector<8x16xf32> to vector<8x16x1xf32>
    %30 = vector.broadcast %29 : vector<8x16x1xf32> to vector<8x16x128xf32>
    %31 = arith.mulf %30, %14 : vector<8x16x128xf32>
    %cst_12 = arith.constant dense<0.000000e+00> : vector<8x128xf32>
    %32 = vector.multi_reduction <add>, %31, %cst_12 [1] : vector<8x16x128xf32> to vector<8x128xf32>
    %33 = arith.truncf %32 : vector<8x128xf32> to vector<8x128xbf16>
    %c0_13 = arith.constant 0 : index
    %c0_14 = arith.constant 0 : index
    %34 = vector.load %arg4[%c0_13, %c0_14] : memref<128x128xbf16, #tpu.memory_space<vmem>>, vector<128x128xbf16>
    %cst_15 = arith.constant dense<0.000000e+00> : vector<8x128xf32>
    %35 = tpu.matmul %33, %34, %cst_15 {dimension_numbers = #tpu.dot_dimension_numbers<[1], [0], [0], [1], [0, 0, 1, 1], [], []>} : vector<8x128xbf16>, vector<128x128xbf16>, vector<8x128xf32> -> vector<8x128xf32>
    %c0_16 = arith.constant 0 : index
    %c0_17 = arith.constant 0 : index
    %36 = vector.load %arg5[%c0_16, %c0_17] : memref<1x128xf32, #tpu.memory_space<vmem>>, vector<1x128xf32>
    %37 = vector.broadcast %36 : vector<1x128xf32> to vector<8x128xf32>
    %38 = arith.addf %35, %37 : vector<8x128xf32>
    %c0_18 = arith.constant 0 : index
    %c0_19 = arith.constant 0 : index
    %39 = vector.load %arg6[%c0_18, %c0_19] : memref<8x128xf32, #tpu.memory_space<vmem>>, vector<8x128xf32>
    tpu.vector_store %arg6[%c0_18, %c0_19], %38 {strides = array<i32>} : memref<8x128xf32, #tpu.memory_space<vmem>>, vector<8x128xf32>,
    return
  }
  func.func @transform_0(%arg0: i32) -> (i32, i32, i32) {
    %c0_i32 = arith.constant 0 : i32
    %c0_i32_0 = arith.constant 0 : i32
    %c0_i32_1 = arith.constant 0 : i32
    return %arg0, %c0_i32, %c0_i32_0 : i32, i32, i32
  }
  func.func @transform_1(%arg0: i32) -> (i32, i32) {
    %c0_i32 = arith.constant 0 : i32
    %c0_i32_0 = arith.constant 0 : i32
    %c0_i32_1 = arith.constant 0 : i32
    return %c0_i32, %c0_i32_0 : i32, i32
  }
  func.func @transform_2(%arg0: i32) -> (i32, i32) {
    %c0_i32 = arith.constant 0 : i32
    %c0_i32_0 = arith.constant 0 : i32
    %c0_i32_1 = arith.constant 0 : i32
    return %c0_i32, %c0_i32_0 : i32, i32
  }
  func.func @transform_3(%arg0: i32) -> (i32, i32) {
    %c0_i32 = arith.constant 0 : i32
    %c0_i32_0 = arith.constant 0 : i32
    %c0_i32_1 = arith.constant 0 : i32
    return %c0_i32, %c0_i32_0 : i32, i32
  }
  func.func @transform_4(%arg0: i32) -> (i32, i32) {
    %c0_i32 = arith.constant 0 : i32
    %c0_i32_0 = arith.constant 0 : i32
    %c0_i32_1 = arith.constant 0 : i32
    return %c0_i32, %c0_i32_0 : i32, i32
  }
  func.func @transform_5(%arg0: i32) -> (i32, i32) {
    %c0_i32 = arith.constant 0 : i32
    %c0_i32_0 = arith.constant 0 : i32
    return %arg0, %c0_i32 : i32, i32
  }
}

</mosaic_0001>

<bundles_post_ra>
// kernel: tpu_custom_call.1
= control target key start
LH: loop header
LB: loop body
LE: loop exit
PB: predicated region body
PF: predicated region fallthrough
CT: control target
= control target key end

     0   :  { %vm81_vm0 = vcmask 1043456   ;;  %s2185_s0 = inlined_call_operand.vmem [shape: f32[8,16,8], index: 0, kind: input, shape index: {}]   ;;  %s2186_s1 = inlined_call_operand.vmem [shape: bf16[8,384], index: 1, kind: input, shape index: {}]   ;;  %s2187_s2 = inlined_call_operand.vmem [shape: f32[1,384], index: 2, kind: input, shape index: {}]   ;;  %s2188_s3 = inlined_call_operand.vmem [shape: bf16[128,128], index: 3, kind: input, shape index: {}]   ;;  %s2189_s4 = inlined_call_operand.vmem [shape: f32[1,128], index: 4, kind: input, shape index: {}]   ;;  %s2190_s5 = inlined_call_operand.hbm [shape: f32[8,128], index: 5, kind: output, shape index: {}]  }
   0x1   :  { %v46_v0 = vld [vmem:[%s2186_s1] sm:$0xff]  ;;  %v36_v2 = vld [vmem:[%s2185_s0 + $0x70] sm:$0xff]  ;;  %v37_v3 = vld [vmem:[%s2185_s0 + $0x78] sm:$0xff] }
   0x2   :  { %v50_v1 = vunpack.c.l.b16 %v46_v0  ;;  %v51_v4 = vunpack.c.h.b16 %v46_v0  ;;  %v22_v5 = vld [vmem:[%s2185_s0] sm:$0xff]  ;;  %v23_v6 = vld [vmem:[%s2185_s0 + $0x8] sm:$0xff] }
   0x3   :  { %10 = vsyncpa [#allocation3], 0  ;;  %v1694_v10 = vpack.c.bf16 %v37_v3, %v36_v2  ;;  %v1697_v12 = vpack.c.bf16 %v23_v6, %v22_v5  ;;  %vm56_vm1 = vcmask 64512   ;;  %v24_v13 = vld [vmem:[%s2185_s0 + $0x10] sm:$0xff]  ;;  %v25_v14 = vld [vmem:[%s2185_s0 + $0x18] sm:$0xff]  ;;  %vm534_vm2 = vcmask 130048  }
   0x4   :  { %v53_v7 = vpack.c.b16 %v50_v1, %v50_v1  ;;  %v54_v8 = vpack.c.b16 %v51_v4, %v51_v4  ;;  %v1709_v15 = vpack.c.bf16 %v25_v14, %v24_v13  ;;  %v26_v16 = vld [vmem:[%s2185_s0 + $0x20] sm:$0xff]  ;;  %v27_v17 = vld [vmem:[%s2185_s0 + $0x28] sm:$0xff]  ;;  %v28_v19 = vld [vmem:[%s2185_s0 + $0x30] sm:$0xff]  ;;  %vm942_vm11 = vcmask 130112   ;;  %s1647_s22 = smov [#allocation2]   ;;  %s1460_s26 = sshll.u32 %s2190_s5, 4  ;;  %s1461_s26 = int_to_ptr.hbm [resolvable:$true] %s1460_s26 }
   0x5   :  { %v1721_v18 = vpack.c.bf16 %v27_v17, %v26_v16  ;;  %v29_v20 = vld [vmem:[%s2185_s0 + $0x38] sm:$0xff]  ;;  %v30_v22 = vld [vmem:[%s2185_s0 + $0x40] sm:$0xff]  ;;  %v31_v23 = vld [vmem:[%s2185_s0 + $0x48] sm:$0xff]  ;;  %s1458_s23 = sshll.u32 %s1647_s22, 4  ;;  %s1459_s23 = int_to_ptr.vmem [resolvable:$true] %s1458_s23 }
   0x6   :  { %v83_v9 = vsel %vm81_vm0, %v53_v7, 0  ;;  %v86_v11 = vsel %vm81_vm0, %v54_v8, 0  ;;  %v1733_v21 = vpack.c.bf16 %v29_v20, %v28_v19  ;;  %v1745_v24 = vpack.c.bf16 %v31_v23, %v30_v22  ;;  %v32_v25 = vld [vmem:[%s2185_s0 + $0x50] sm:$0xff]  ;;  %v33_v26 = vld [vmem:[%s2185_s0 + $0x58] sm:$0xff]  ;;  %v34_v28 = vld [vmem:[%s2185_s0 + $0x60] sm:$0xff] }
   0x7   :  { %1541 = vmatpush.bf16.msra.mxu1 %v83_v9  ;;  %98 = vmatpush.bf16.msra.mxu0 %v83_v9  ;;  %v1757_v27 = vpack.c.bf16 %v33_v26, %v32_v25  ;;  %v35_v29 = vld [vmem:[%s2185_s0 + $0x68] sm:$0xff]  ;;  %v238_v31 = vld [vmem:[%s2187_s2] sm:$0x7] }
   0x8   :  { %v1769_v30 = vpack.c.bf16 %v35_v29, %v34_v28  ;;  %v1780_v34 = vperm.slane %v238_v31, 0  ;;  %v1792_v46 = vperm.slane %v238_v31, 1 }
   0xa   :  { %1476 = vmatmul.msk.bf16.vlgmr.msra.gmra.mxu1 %vm56_vm1, %v1694_v10  ;;  %1469 = vmatmul.msk.bf16.vlgmr.msra.gmra.mxu0 %vm56_vm1, %v1697_v12 }
   0xb   :  { %147 = vmatpush.bf16.msrb.mxu1 %v86_v11 }
  0x1a   :  { %1477 = vmatmul.msk.bf16.vlgmr.msrb.gmra.mxu1 %vm56_vm1, %v1697_v12  ;;  %1470 = vmatmul.msk.bf16.gmra.mxu0 %vm56_vm1, %v1709_v15 }
  0x2a   :  { %1478 = vmatmul.msk.bf16.gmra.mxu1 %vm56_vm1, %v1709_v15  ;;  %1471 = vmatmul.msk.bf16.gmra.mxu0 %vm56_vm1, %v1721_v18 }
  0x3a   :  { %1479 = vmatmul.msk.bf16.gmra.mxu1 %vm56_vm1, %v1721_v18  ;;  %1472 = vmatmul.msk.bf16.gmra.mxu0 %vm56_vm1, %v1733_v21 }
  0x4a   :  { %1480 = vmatmul.msk.bf16.gmra.mxu1 %vm56_vm1, %v1733_v21  ;;  %1473 = vmatmul.msk.bf16.gmra.mxu0 %vm56_vm1, %v1745_v24 }
  0x5a   :  { %1481 = vmatmul.msk.bf16.gmra.mxu1 %vm56_vm1, %v1745_v24  ;;  %1474 = vmatmul.msk.bf16.gmra.mxu0 %vm56_vm1, %v1757_v27 }
  0x6a   :  { %1482 = vmatmul.msk.bf16.gmra.mxu1 %vm56_vm1, %v1757_v27  ;;  %1475 = vmatmul.msk.bf16.gmra.mxu0 %vm56_vm1, %v1769_v30 }
  0x7a   :  { %1483 = vmatmul.msk.bf16.gmra.mxu1 %vm56_vm1, %v1769_v30 }
  0x87   :  { %v135_v32 = vpop.f32.mrf.mxu1  ;;  %v100_v33 = vpop.f32.mrf.mxu0 }
  0x88   :  { %v288_v35 = vadd.f32 %v1780_v34, %v135_v32  ;;  %v246_v52 = vadd.f32 %v1780_v34, %v100_v33 }
  0x8a   :  { %1484 = vmatmul.msk.bf16.gmra.mxu1 %vm56_vm1, %v1694_v10  ;;  %v308_v38 = vpack.c.bf16 %v288_v35, %v288_v35  ;;  %v294_v57 = vpack.c.bf16 %v246_v52, %v246_v52 }
  0x8c   :  { %v1786_v41 = vunpack.c.l.b16 %v308_v38  ;;  %v328_v62 = vunpack.c.l.b16 %v294_v57 }
  0x8f   :  { %v137_v36 = vpop.f32.mrf.mxu1  ;;  %v102_v37 = vpop.f32.mrf.mxu0 }
  0x90   :  { %v291_v39 = vadd.f32 %v1780_v34, %v137_v36  ;;  %v249_v53 = vadd.f32 %v1780_v34, %v102_v37 }
  0x92   :  { %v309_v40 = vpack.c.bf16 %v291_v39, %v291_v39  ;;  %v295_v58 = vpack.c.bf16 %v249_v53, %v249_v53 }
  0x94   :  { %v1788_v42 = vunpack.c.l.b16 %v309_v40  ;;  %v329_v63 = vunpack.c.l.b16 %v295_v58 }
  0x96   :  { %v512_v43 = vpack.c.b16 %v1788_v42, %v1786_v41  ;;  %v330_v1 = vpack.c.b16 %v329_v63, %v328_v62 }
  0x97   :  { %v149_v44 = vpop.f32.mrf.mxu1  ;;  %v105_v45 = vpop.f32.mrf.mxu0 }
  0x98   :  { %v247_v47 = vadd.f32 %v1792_v46, %v149_v44  ;;  %v252_v6 = vadd.f32 %v1780_v34, %v105_v45 }
  0x9a   :  { %v310_v50 = vpack.c.bf16 %v247_v47, %v247_v47  ;;  %v296_v13 = vpack.c.bf16 %v252_v6, %v252_v6 }
  0x9c   :  { %v334_v55 = vunpack.c.l.b16 %v310_v50  ;;  %v354_v20 = vunpack.c.l.b16 %v296_v13 }
  0x9f   :  { %v151_v48 = vpop.f32.mrf.mxu1  ;;  %v107_v49 = vpop.f32.mrf.mxu0 }
  0xa0   :  { %v250_v51 = vadd.f32 %v1792_v46, %v151_v48  ;;  %v255_v7 = vadd.f32 %v1780_v34, %v107_v49 }
  0xa2   :  { %v311_v54 = vpack.c.bf16 %v250_v51, %v250_v51  ;;  %v297_v14 = vpack.c.bf16 %v255_v7, %v255_v7 }
  0xa4   :  { %v335_v56 = vunpack.c.l.b16 %v311_v54  ;;  %v355_v22 = vunpack.c.l.b16 %v297_v14 }
  0xa6   :  { %v336_v59 = vpack.c.b16 %v335_v56, %v334_v55  ;;  %v356_v25 = vpack.c.b16 %v355_v22, %v354_v20 }
  0xa7   :  { %v154_v60 = vpop.f32.mrf.mxu1  ;;  %v110_v61 = vpop.f32.mrf.mxu0 }
  0xa8   :  { %345 = vmatpush.bf16.xpose.msra.mxu3 %v336_v59  ;;  %v253_v0 = vadd.f32 %v1792_v46, %v154_v60  ;;  %v258_v31 = vadd.f32 %v1780_v34, %v110_v61 }
  0xaa   :  { %v312_v4 = vpack.c.bf16 %v253_v0, %v253_v0  ;;  %v298_v38 = vpack.c.bf16 %v258_v31, %v258_v31 }
  0xac   :  { %v360_v9 = vunpack.c.l.b16 %v312_v4  ;;  %v380_v45 = vunpack.c.l.b16 %v298_v38 }
  0xaf   :  { %v156_v2 = vpop.f32.mrf.mxu1  ;;  %346 = vmatmul.bf16.vlgmr.msra.gmra.mxu3 %v330_v1  ;;  %v112_v3 = vpop.f32.mrf.mxu0 }
  0xb0   :  { %v256_v5 = vadd.f32 %v1792_v46, %v156_v2  ;;  %v261_v32 = vadd.f32 %v1780_v34, %v112_v3 }
  0xb2   :  { %v313_v8 = vpack.c.bf16 %v256_v5, %v256_v5  ;;  %v299_v39 = vpack.c.bf16 %v261_v32, %v261_v32 }
  0xb4   :  { %v361_v11 = vunpack.c.l.b16 %v313_v8  ;;  %v381_v47 = vunpack.c.l.b16 %v299_v39 }
  0xb6   :  { %v362_v16 = vpack.c.b16 %v361_v11, %v360_v9  ;;  %v382_v50 = vpack.c.b16 %v381_v47, %v380_v45 }
  0xb7   :  { %v159_v17 = vpop.f32.mrf.mxu1  ;;  %v115_v19 = vpop.f32.mrf.mxu0 }
  0xb8   :  { %371 = vmatpush.bf16.xpose.msrb.mxu3 %v362_v16  ;;  %v259_v23 = vadd.f32 %v1792_v46, %v159_v17  ;;  %v264_v54 = vadd.f32 %v1780_v34, %v115_v19 }
  0xba   :  { %v314_v28 = vpack.c.bf16 %v259_v23, %v259_v23  ;;  %v300_v59 = vpack.c.bf16 %v264_v54, %v264_v54 }
  0xbc   :  { %v386_v36 = vunpack.c.l.b16 %v314_v28  ;;  %v406_v0 = vunpack.c.l.b16 %v300_v59 }
  0xbf   :  { %v161_v26 = vpop.f32.mrf.mxu1  ;;  %372 = vmatmul.bf16.vlgmr.msrb.gmra.mxu3 %v356_v25  ;;  %v117_v35 = vpop.f32.mrf.mxu0 }
  0xc0   :  { %v262_v29 = vadd.f32 %v1792_v46, %v161_v26  ;;  %v267_v55 = vadd.f32 %v1780_v34, %v117_v35 }
  0xc2   :  { %v315_v33 = vpack.c.bf16 %v262_v29, %v262_v29  ;;  %v301_v60 = vpack.c.bf16 %v267_v55, %v267_v55 }
  0xc4   :  { %v387_v37 = vunpack.c.l.b16 %v315_v33  ;;  %v407_v1 = vunpack.c.l.b16 %v301_v60 }
  0xc6   :  { %v388_v40 = vpack.c.b16 %v387_v37, %v386_v36  ;;  %v408_v3 = vpack.c.b16 %v407_v1, %v406_v0 }
  0xc7   :  { %v164_v44 = vpop.f32.mrf.mxu1  ;;  %v120_v49 = vpop.f32.mrf.mxu0 }
  0xc8   :  { %397 = vmatpush.bf16.xpose.msra.mxu3 %v388_v40  ;;  %v265_v48 = vadd.f32 %v1792_v46, %v164_v44  ;;  %v270_v8 = vadd.f32 %v1780_v34, %v120_v49 }
  0xca   :  { %v316_v52 = vpack.c.bf16 %v265_v48, %v265_v48  ;;  %v302_v16 = vpack.c.bf16 %v270_v8, %v270_v8 }
  0xcc   :  { %v412_v57 = vunpack.c.l.b16 %v316_v52  ;;  %v432_v22 = vunpack.c.l.b16 %v302_v16 }
  0xcf   :  { %v166_v51 = vpop.f32.mrf.mxu1  ;;  %398 = vmatmul.bf16.vlgmr.msra.gmra.mxu3 %v382_v50  ;;  %v122_v62 = vpop.f32.mrf.mxu0 }
  0xd0   :  { %v268_v53 = vadd.f32 %v1792_v46, %v166_v51  ;;  %v273_v9 = vadd.f32 %v1780_v34, %v122_v62 }
  0xd2   :  { %v317_v56 = vpack.c.bf16 %v268_v53, %v268_v53  ;;  %v303_v17 = vpack.c.bf16 %v273_v9, %v273_v9 }
  0xd4   :  { %v413_v58 = vunpack.c.l.b16 %v317_v56  ;;  %v433_v23 = vunpack.c.l.b16 %v303_v17 }
  0xd6   :  { %v414_v61 = vpack.c.b16 %v413_v58, %v412_v57  ;;  %v434_v28 = vpack.c.b16 %v433_v23, %v432_v22 }
  0xd7   :  { %v169_v63 = vpop.f32.mrf.mxu1  ;;  %v125_v7 = vpop.f32.mrf.mxu0 }
  0xd8   :  { %423 = vmatpush.bf16.xpose.msrb.mxu3 %v414_v61  ;;  %v271_v2 = vadd.f32 %v1792_v46, %v169_v63  ;;  %v276_v33 = vadd.f32 %v1780_v34, %v125_v7 }
  0xda   :  { %v318_v5 = vpack.c.bf16 %v271_v2, %v271_v2  ;;  %v304_v40 = vpack.c.bf16 %v276_v33, %v276_v33 }
  0xdc   :  { %v438_v13 = vunpack.c.l.b16 %v318_v5  ;;  %v458_v48 = vunpack.c.l.b16 %v304_v40  ;;  %v47_v40 = vld [vmem:[%s2186_s1 + $0x8] sm:$0xf] }
  0xdf   :  { %v171_v4 = vpop.f32.mrf.mxu1  ;;  %424 = vmatmul.bf16.vlgmr.msrb.gmra.mxu3 %v408_v3  ;;  %v127_v25 = vpop.f32.mrf.mxu0 }
  0xe0   :  { %v274_v6 = vadd.f32 %v1792_v46, %v171_v4  ;;  %v279_v35 = vadd.f32 %v1780_v34, %v127_v25 }
  0xe2   :  { %v319_v11 = vpack.c.bf16 %v274_v6, %v274_v6  ;;  %v305_v44 = vpack.c.bf16 %v279_v35, %v279_v35 }
  0xe4   :  { %v439_v14 = vunpack.c.l.b16 %v319_v11  ;;  %v459_v49 = vunpack.c.l.b16 %v305_v44  ;;  %v52_v44 = vunpack.c.l.b16 %v47_v40 }
  0xe6   :  { %v440_v19 = vpack.c.b16 %v439_v14, %v438_v13  ;;  %v460_v51 = vpack.c.b16 %v459_v49, %v458_v48 }
  0xe7   :  { %v174_v20 = vpop.f32.mrf.mxu1  ;;  %v130_v39 = vpop.f32.mrf.mxu0 }
  0xe8   :  { %449 = vmatpush.bf16.xpose.msra.mxu3 %v440_v19  ;;  %v277_v26 = vadd.f32 %v1792_v46, %v174_v20  ;;  %v282_v56 = vadd.f32 %v1780_v34, %v130_v39 }
  0xea   :  { %v320_v31 = vpack.c.bf16 %v277_v26, %v277_v26  ;;  %v306_v61 = vpack.c.bf16 %v282_v56, %v282_v56 }
  0xec   :  { %v464_v37 = vunpack.c.l.b16 %v320_v31  ;;  %v484_v1 = vunpack.c.l.b16 %v306_v61 }
  0xef   :  { %v176_v29 = vpop.f32.mrf.mxu1  ;;  %450 = vmatmul.bf16.vlgmr.msra.gmra.mxu3 %v434_v28  ;;  %v132_v52 = vpop.f32.mrf.mxu0 }
  0xf0   :  { %v280_v32 = vadd.f32 %v1792_v46, %v176_v29  ;;  %v285_v57 = vadd.f32 %v1780_v34, %v132_v52 }
  0xf2   :  { %v321_v36 = vpack.c.bf16 %v280_v32, %v280_v32  ;;  %v307_v62 = vpack.c.bf16 %v285_v57, %v285_v57 }
  0xf4   :  { %v465_v38 = vunpack.c.l.b16 %v321_v36  ;;  %v485_v2 = vunpack.c.l.b16 %v307_v62 }
  0xf6   :  { %v466_v45 = vpack.c.b16 %v465_v38, %v464_v37  ;;  %v486_v4 = vpack.c.b16 %v485_v2, %v484_v1 }
  0xf7   :  { %v179_v47 = vpop.f32.mrf.mxu1 }
  0xf8   :  { %475 = vmatpush.bf16.xpose.msrb.mxu3 %v466_v45  ;;  %v283_v50 = vadd.f32 %v1792_v46, %v179_v47  ;;  %v55_v45 = vpack.c.b16 %v52_v44, %v52_v44 }
  0xfa   :  { %v322_v54 = vpack.c.bf16 %v283_v50, %v283_v50  ;;  %v89_v47 = vsel %vm81_vm0, %v55_v45, 0 }
  0xfb   :  { %196 = vmatpush.bf16.msra.mxu2 %v89_v47 }
  0xfc   :  { %v490_v59 = vunpack.c.l.b16 %v322_v54 }
  0xfe   :  { %1485 = vmatmul.msk.bf16.vlgmr.msra.gmra.mxu2 %vm56_vm1, %v1697_v12 }
  0xff   :  { %v181_v53 = vpop.f32.mrf.mxu1  ;;  %476 = vmatmul.bf16.vlgmr.msrb.gmra.mxu3 %v460_v51 }
 0x100   :  { %v286_v55 = vadd.f32 %v1792_v46, %v181_v53 }
 0x102   :  { %v323_v58 = vpack.c.bf16 %v286_v55, %v286_v55 }
 0x104   :  { %v491_v60 = vunpack.c.l.b16 %v323_v58 }
 0x106   :  { %v492_v63 = vpack.c.b16 %v491_v60, %v490_v59 }
 0x107   :  { %v184_v0 = vpop.f32.mrf.mxu1 }
 0x108   :  { %501 = vmatpush.bf16.xpose.msra.mxu3 %v492_v63  ;;  %v289_v3 = vadd.f32 %v1792_v46, %v184_v0 }
 0x10a   :  { %v324_v6 = vpack.c.bf16 %v289_v3, %v289_v3 }
 0x10c   :  { %v516_v34 = vunpack.c.l.b16 %v324_v6 }
 0x10e   :  { %1486 = vmatmul.msk.bf16.gmra.mxu2 %vm56_vm1, %v1709_v15 }
 0x10f   :  { %v186_v5 = vpop.f32.mrf.mxu1  ;;  %502 = vmatmul.bf16.vlgmr.msra.gmra.mxu3 %v486_v4 }
 0x110   :  { %v292_v7 = vadd.f32 %v1792_v46, %v186_v5 }
 0x112   :  { %v325_v8 = vpack.c.bf16 %v292_v7, %v292_v7 }
 0x114   :  { %v517_v9 = vunpack.c.l.b16 %v325_v8 }
 0x116   :  { %v518_v11 = vpack.c.b16 %v517_v9, %v516_v34 }
 0x118   :  { %527 = vmatpush.bf16.xpose.msrb.mxu3 %v518_v11 }
 0x11e   :  { %1487 = vmatmul.msk.bf16.gmra.mxu2 %vm56_vm1, %v1721_v18 }
 0x11f   :  { %528 = vmatmul.bf16.vlgmr.msrb.gmra.mxu3 %v512_v43 }
 0x12e   :  { %1488 = vmatmul.msk.bf16.gmra.mxu2 %vm56_vm1, %v1733_v21 }
 0x132   :  { %v347_v13 = vpop.f32.mrf.mxu3 }
 0x133   :  { %v535_v14 = vsel %vm534_vm2, %v347_v13, -inf }
 0x134   :  { %536 = vmax.xlane.f32.xlu0 %v535_v14 }
 0x13a   :  { %v349_v16 = vpop.f32.mrf.mxu3 }
 0x13b   :  { %v538_v17 = vsel %vm534_vm2, %v349_v16, -inf }
 0x13c   :  { %539 = vmax.xlane.f32.xlu0 %v538_v17 }
 0x13e   :  { %1489 = vmatmul.msk.bf16.gmra.mxu2 %vm56_vm1, %v1745_v24 }
 0x142   :  { %v1829_v19 = vpop.f32.mrf.mxu3 }
 0x143   :  { %v541_v46 = vsel %vm534_vm2, %v1829_v19, -inf }
 0x144   :  { %542 = vmax.xlane.f32.xlu2 %v541_v46 }
 0x14a   :  { %v1833_v20 = vpop.f32.mrf.mxu3 }
 0x14b   :  { %v544_v41 = vsel %vm534_vm2, %v1833_v20, -inf }
 0x14c   :  { %545 = vmax.xlane.f32.xlu0 %v544_v41 }
 0x14e   :  { %1490 = vmatmul.msk.bf16.gmra.mxu2 %vm56_vm1, %v1757_v27 }
 0x152   :  { %v1837_v42 = vpop.f32.mrf.mxu3 }
 0x153   :  { %v547_v43 = vsel %vm534_vm2, %v1837_v42, -inf }
 0x154   :  { %548 = vmax.xlane.f32.xlu2 %v547_v43 }
 0x15a   :  { %v1841_v22 = vpop.f32.mrf.mxu3 }
 0x15b   :  { %v550_v23 = vsel %vm534_vm2, %v1841_v22, -inf }
 0x15c   :  { %551 = vmax.xlane.f32.xlu2 %v550_v23 }
 0x15e   :  { %1491 = vmatmul.msk.bf16.gmra.mxu2 %vm56_vm1, %v1769_v30 }
 0x162   :  { %v1845_v25 = vpop.f32.mrf.mxu3 }
 0x163   :  { %v553_v26 = vsel %vm534_vm2, %v1845_v25, -inf }
 0x164   :  { %554 = vmax.xlane.f32.xlu1 %v553_v26 }
 0x16a   :  { %v1849_v28 = vpop.f32.mrf.mxu3 }
 0x16b   :  { %v556_v29 = vsel %vm534_vm2, %v1849_v28, -inf }
 0x16c   :  { %557 = vmax.xlane.f32.xlu1 %v556_v29 }
 0x16e   :  { %1492 = vmatmul.msk.bf16.gmra.mxu2 %vm56_vm1, %v1694_v10 }
 0x172   :  { %v1853_v31 = vpop.f32.mrf.mxu3 }
 0x173   :  { %v559_v32 = vsel %vm534_vm2, %v1853_v31, -inf }
 0x174   :  { %560 = vmax.xlane.f32.xlu0 %v559_v32 }
 0x17a   :  { %v1857_v33 = vpop.f32.mrf.mxu3 }
 0x17b   :  { %v562_v35 = vsel %vm534_vm2, %v1857_v33, -inf }
 0x17c   :  { %563 = vmax.xlane.f32.xlu1 %v562_v35 }
 0x182   :  { %v1861_v36 = vpop.f32.mrf.mxu3 }
 0x183   :  { %v565_v51 = vsel %vm534_vm2, %v1861_v36, -inf }
 0x18a   :  { %v1863_v37 = vpop.f32.mrf.mxu3 }
 0x18b   :  { %v568_v57 = vsel %vm534_vm2, %v1863_v37, -inf }
 0x192   :  { %v1865_v38 = vpop.f32.mrf.mxu3 }
 0x193   :  { %v571_v39 = vsel %vm534_vm2, %v1865_v38, -inf }
 0x194   :  { %572 = vmax.xlane.f32.xlu1 %v571_v39 }
 0x19a   :  { %v1873_v48 = vpop.f32.mrf.mxu3 }
 0x19b   :  { %v574_v49 = vsel %vm534_vm2, %v1873_v48, -inf }
 0x19c   :  { %575 = vmax.xlane.f32.xlu2 %v574_v49 }
 0x1a2   :  { %v1879_v50 = vpop.f32.mrf.mxu3 }
 0x1a3   :  { %v577_v52 = vsel %vm534_vm2, %v1879_v50, -inf }
 0x1a4   :  { %566 = vmax.xlane.f32.xlu2 %v565_v51  ;;  %578 = vmax.xlane.f32.xlu0 %v577_v52 }
 0x1a7   :  { %v537_v53 = vpop.xlane.xlu0 %536 }
 0x1a8   :  { %v583_v54 = vsub.f32 %v347_v13, %v537_v53 }
 0x1aa   :  { %v599_v55 = vmul.f32 1.442695, %v583_v54  ;;  %v1885_v56 = vpop.f32.mrf.mxu3 }
 0x1ab   :  { %v580_v12 = vsel %vm534_vm2, %v1885_v56, -inf }
 0x1ac   :  { %1556 = vpow2.f32 %v599_v55  ;;  %569 = vmax.xlane.f32.xlu0 %v568_v57  ;;  %581 = vmax.xlane.f32.xlu1 %v580_v12 }
 0x1af   :  { %v540_v58 = vpop.xlane.xlu0 %539 }
 0x1b0   :  { %v584_v59 = vsub.f32 %v349_v16, %v540_v58 }
 0x1b2   :  { %v1557_v60 = vpop.eup %1556  ;;  %v601_v61 = vmul.f32 1.442695, %v584_v59 }
 0x1b3   :  { %v631_v62 = vsel %vm534_vm2, %v1557_v60, 0.0 }
 0x1b4   :  { %1558 = vpow2.f32 %v601_v61  ;;  %632 = vadd.xlane.f32.xlu1 %v631_v62 }
 0x1b7   :  { %v543_v0 = vpop.xlane.xlu2 %542 }
 0x1b8   :  { %v585_v2 = vsub.f32 %v1829_v19, %v543_v0 }
 0x1ba   :  { %v1559_v63 = vpop.eup %1558  ;;  %v603_v4 = vmul.f32 1.442695, %v585_v2 }
 0x1bb   :  { %960 = vmatpush.msrb.mxu2 %v1559_v63  ;;  %v634_v1 = vsel %vm534_vm2, %v1559_v63, 0.0 }
 0x1bc   :  { %635 = vadd.xlane.f32.xlu2 %v634_v1 }
 0x1bd   :  { %961 = vmatpush.msrb.mxu2 %v1557_v60 }
 0x1bf   :  { %v546_v15 = vpop.xlane.xlu0 %545 }
 0x1c0   :  { %v586_v3 = vsub.f32 %v1833_v20, %v546_v15 }
 0x1c2   :  { %v605_v5 = vmul.f32 1.442695, %v586_v3 }
 0x1c4   :  { %1560 = vpow2.f32 %v605_v5 }
 0x1c5   :  { %1562 = vpow2.f32 %v603_v4 }
 0x1c7   :  { %v549_v6 = vpop.xlane.xlu2 %548 }
 0x1c8   :  { %v587_v7 = vsub.f32 %v1837_v42, %v549_v6  ;;  %v1945_v6 = vpop.f32.mrf.mxu2 }
 0x1ca   :  { %v1561_v8 = vpop.eup %1560  ;;  %v607_v34 = vmul.f32 1.442695, %v587_v7 }
 0x1cb   :  { %987 = vmatpush.msra.mxu1 %v1561_v8  ;;  %v640_v9 = vsel %vm534_vm2, %v1561_v8, 0.0  ;;  %v1563_v11 = vpop.eup %1562 }
 0x1cc   :  { %1564 = vpow2.f32 %v607_v34  ;;  %641 = vadd.xlane.f32.xlu1 %v640_v9  ;;  %v637_v39 = vsel %vm534_vm2, %v1563_v11, 0.0 }
 0x1cd   :  { %988 = vmatpush.msra.mxu1 %v1563_v11 }
 0x1cf   :  { %v552_v18 = vpop.xlane.xlu2 %551 }
 0x1d0   :  { %v588_v13 = vsub.f32 %v1841_v22, %v552_v18 }
 0x1d2   :  { %v1565_v14 = vpop.eup %1564  ;;  %v609_v16 = vmul.f32 1.442695, %v588_v13  ;;  %v1949_v13 = vpop.f32.mrf.mxu2 }
 0x1d3   :  { %v643_v17 = vsel %vm534_vm2, %v1565_v14, 0.0 }
 0x1d4   :  { %1566 = vpow2.f32 %v609_v16  ;;  %644 = vadd.xlane.f32.xlu2 %v643_v17 }
 0x1d7   :  { %v555_v19 = vpop.xlane.xlu1 %554 }
 0x1d8   :  { %v589_v46 = vsub.f32 %v1845_v25, %v555_v19 }
 0x1da   :  { %v1567_v20 = vpop.eup %1566  ;;  %v611_v41 = vmul.f32 1.442695, %v589_v46 }
 0x1db   :  { %1014 = vmatpush.msra.mxu2 %v1567_v20  ;;  %v646_v42 = vsel %vm534_vm2, %v1567_v20, 0.0 }
 0x1dc   :  { %1568 = vpow2.f32 %v611_v41  ;;  %647 = vadd.xlane.f32.xlu0 %v646_v42  ;;  %v937_v42 = vlaneseq }
 0x1dd   :  { %1015 = vmatpush.msra.mxu2 %v1565_v14 }
 0x1df   :  { %v558_v21 = vpop.xlane.xlu1 %557 }
 0x1e0   :  { %v590_v43 = vsub.f32 %v1849_v28, %v558_v21 }
 0x1e2   :  { %v1569_v22 = vpop.eup %1568  ;;  %v613_v23 = vmul.f32 1.442695, %v590_v43 }
 0x1e3   :  { %v649_v26 = vsel %vm534_vm2, %v1569_v22, 0.0 }
 0x1e4   :  { %1570 = vpow2.f32 %v613_v23  ;;  %650 = vadd.xlane.f32.xlu0 %v649_v26 }
 0x1e7   :  { %v561_v25 = vpop.xlane.xlu0 %560 }
 0x1e8   :  { %v591_v29 = vsub.f32 %v1853_v31, %v561_v25 }
 0x1ea   :  { %v1571_v32 = vpop.eup %1570  ;;  %v615_v35 = vmul.f32 1.442695, %v591_v29  ;;  %v1952_v29 = vand.u32 127, %v937_v42 }
 0x1eb   :  { %1041 = vmatpush.msra.mxu3 %v1571_v32  ;;  %v652_v40 = vsel %vm534_vm2, %v1571_v32, 0.0  ;;  %v1954_v32 = vpop.f32.mrf.mxu2 }
 0x1ec   :  { %1572 = vpow2.f32 %v615_v35  ;;  %638 = vadd.xlane.f32.xlu0 %v637_v39  ;;  %653 = vadd.xlane.f32.xlu1 %v652_v40 }
 0x1ed   :  { %1042 = vmatpush.msra.mxu3 %v1569_v22 }
 0x1ef   :  { %v564_v24 = vpop.xlane.xlu1 %563 }
 0x1f0   :  { %v592_v28 = vsub.f32 %v1857_v33, %v564_v24  ;;  %v1957_v24 = vadd.s32 4294967288, %v1952_v29 }
 0x1f2   :  { %v1573_v44 = vpop.eup %1572  ;;  %v617_v45 = vmul.f32 1.442695, %v592_v28 }
 0x1f3   :  { %v655_v31 = vsel %vm534_vm2, %v1573_v44, 0.0 }
 0x1f4   :  { %1574 = vpow2.f32 %v617_v45  ;;  %656 = vadd.xlane.f32.xlu1 %v655_v31 }
 0x1fa   :  { %v1575_v47 = vpop.eup %1574 }
 0x1fb   :  { %1068 = vmatpush.msrb.mxu3 %v1575_v47  ;;  %v658_v49 = vsel %vm534_vm2, %v1575_v47, 0.0 }
 0x1fc   :  { %659 = vadd.xlane.f32.xlu2 %v658_v49 }
 0x1fd   :  { %1069 = vmatpush.msrb.mxu3 %v1573_v44 }
 0x207   :  { %v573_v51 = vpop.xlane.xlu1 %572 }
 0x208   :  { %v595_v27 = vsub.f32 %v1865_v38, %v573_v51  ;;  %v1964_v51 = vpop.f32.mrf.mxu2 }
 0x20a   :  { %v623_v52 = vmul.f32 1.442695, %v595_v27 }
 0x20c   :  { %1576 = vpow2.f32 %v623_v52 }
 0x20f   :  { %v576_v33 = vpop.xlane.xlu2 %575 }
 0x210   :  { %v596_v53 = vsub.f32 %v1873_v48, %v576_v33 }
 0x212   :  { %v1925_v54 = vpop.eup %1576  ;;  %v625_v55 = vmul.f32 1.442695, %v596_v53 }
 0x213   :  { %v667_v57 = vsel %vm534_vm2, %v1925_v54, 0.0 }
 0x214   :  { %1578 = vpow2.f32 %v625_v55  ;;  %668 = vadd.xlane.f32.xlu2 %v667_v57  ;;  %v1970_v57 = vpop.f32.mrf.mxu2 }
 0x217   :  { %v567_v30 = vpop.xlane.xlu2 %566  ;;  %v579_v12 = vpop.xlane.xlu0 %578 }
 0x218   :  { %v593_v38 = vsub.f32 %v1861_v36, %v567_v30  ;;  %v597_v58 = vsub.f32 %v1879_v50, %v579_v12 }
 0x21a   :  { %v1931_v59 = vpop.eup %1578  ;;  %v619_v10 = vmul.f32 1.442695, %v593_v38  ;;  %v627_v60 = vmul.f32 1.442695, %v597_v58 }
 0x21b   :  { %v670_v48 = vsel %vm534_vm2, %v1931_v59, 0.0 }
 0x21c   :  { %1580 = vpow2.f32 %v619_v10  ;;  %671 = vadd.xlane.f32.xlu0 %v670_v48 }
 0x21d   :  { %1582 = vpow2.f32 %v627_v60 }
 0x21f   :  { %v570_v61 = vpop.xlane.xlu0 %569  ;;  %v582_v62 = vpop.xlane.xlu1 %581 }
 0x220   :  { %v594_v63 = vsub.f32 %v1863_v37, %v570_v61  ;;  %v598_v0 = vsub.f32 %v1885_v56, %v582_v62 }
 0x222   :  { %v1581_v1 = vpop.eup %1580  ;;  %v621_v36 = vmul.f32 1.442695, %v594_v63  ;;  %v629_v2 = vmul.f32 1.442695, %v598_v0 }
 0x223   :  { %v1937_v50 = vpop.eup %1582  ;;  %v661_v15 = vsel %vm534_vm2, %v1581_v1, 0.0 }
 0x224   :  { %1584 = vpow2.f32 %v621_v36  ;;  %662 = vadd.xlane.f32.xlu0 %v661_v15  ;;  %v673_v3 = vsel %vm534_vm2, %v1937_v50, 0.0 }
 0x225   :  { %1586 = vpow2.f32 %v629_v2  ;;  %674 = vadd.xlane.f32.xlu1 %v673_v3  ;;  %v1979_v3 = vpop.f32.mrf.mxu2 }
 0x227   :  { %v633_v4 = vpop.xlane.xlu1 %632 }
 0x228   :  { %1588 = vrcp.f32 %v633_v4  ;;  %v690_v17 = vand.u32 2147483648, %v633_v4  ;;  %vm684_vm4 = vweird.f32 %v633_v4  ;;  %v688_v46 = vand.u32 2147483647, %v633_v4 }
 0x22a   :  { %v1585_v5 = vpop.eup %1584  ;;  %v691_v21 = vor.u32 1.1754944e-38, %v690_v17  ;;  %vm689_vm7 = vcmp.eq.f32.partialorder %v688_v46, 8.507059e+37 }
 0x22b   :  { %v1942_v37 = vpop.eup %1586  ;;  %1095 = vmatpush.msrb.mxu1 %v1585_v5  ;;  %v664_v56 = vsel %vm534_vm2, %v1585_v5, 0.0 }
 0x22c   :  { %v676_v7 = vsel %vm534_vm2, %v1942_v37, 0.0 }
 0x22d   :  { %665 = vadd.xlane.f32.xlu1 %v664_v56  ;;  %677 = vadd.xlane.f32.xlu2 %v676_v7 }
 0x22e   :  { %v1589_v8 = vpop.eup %1588  ;;  %1096 = vmatpush.msrb.mxu1 %v1581_v1 }
 0x22f   :  { %v680_v34 = vmul.f32 %v1589_v8, %v633_v4  ;;  %v636_v9 = vpop.xlane.xlu2 %635  ;;  %vm685_vm3 = vweird.f32 %v1589_v8 }
 0x230   :  { %1590 = vrcp.f32 %v636_v9  ;;  %vm686_vm5 = vmor %vm684_vm4, %vm685_vm3  ;;  %v705_v22 = vand.u32 2147483648, %v636_v9  ;;  %v703_v23 = vand.u32 2147483647, %v636_v9  ;;  %vm699_vm8 = vweird.f32 %v636_v9 }
 0x231   :  { %v681_v11 = vsub.f32 1.0, %v680_v34 }
 0x232   :  { %v706_v39 = vor.u32 1.1754944e-38, %v705_v22  ;;  %vm704_vm10 = vcmp.eq.f32.partialorder %v703_v23, 8.507059e+37 }
 0x233   :  { %v682_v18 = vmul.f32 %v1589_v8, %v681_v11 }
 0x235   :  { %v683_v16 = vadd.f32 %v1589_v8, %v682_v18 }
 0x236   :  { %v1591_v14 = vpop.eup %1590 }
 0x237   :  { %v695_v19 = vmul.f32 %v1591_v14, %v636_v9  ;;  %v687_v41 = vsel %vm686_vm5, %v1589_v8, %v683_v16  ;;  %vm700_vm6 = vweird.f32 %v1591_v14 }
 0x238   :  { %v692_v25 = vsel %vm689_vm7, %v691_v21, %v687_v41  ;;  %vm701_vm9 = vmor %vm699_vm8, %vm700_vm6 }
 0x239   :  { %v696_v20 = vsub.f32 1.0, %v695_v19  ;;  %v919_v40 = vmul.f32 0.0625, %v692_v25 }
 0x23b   :  { %v697_v43 = vmul.f32 %v1591_v14, %v696_v20  ;;  %v939_v45 = vperm.slane %v919_v40, %v1952_v29  ;;  %v2000_v40 = vpop.f32.mrf.mxu2 }
 0x23d   :  { %v698_v26 = vadd.f32 %v1591_v14, %v697_v43 }
 0x23f   :  { %v702_v35 = vsel %vm701_vm9, %v1591_v14, %v698_v26  ;;  %v1966_v27 = vpop.xlane.xlu1 %641 }
 0x240   :  { %v707_v28 = vsel %vm704_vm10, %v706_v39, %v702_v35  ;;  %v733_v46 = vand.u32 2147483647, %v1966_v27  ;;  %v735_v20 = vand.u32 2147483648, %v1966_v27  ;;  %vm729_vm6 = vweird.f32 %v1966_v27 }
 0x241   :  { %v920_v44 = vmul.f32 0.0625, %v707_v28 }
 0x242   :  { %vm734_vm9 = vcmp.eq.f32.partialorder %v733_v46, 8.507059e+37 }
 0x243   :  { %v941_v31 = vperm.slane %v920_v44, %v1957_v24  ;;  %v736_v44 = vor.u32 1.1754944e-38, %v735_v20 }
 0x245   :  { %v943_v47 = vsel %vm942_vm11, %v941_v31, %v939_v45 }
 0x246   :  { %1493 = vmatmul.msk.f32.vlgmr.msrb.gmra.mxu2 %vm534_vm2, %v943_v47 }
 0x247   :  { %v645_v49 = vpop.xlane.xlu2 %644  ;;  %1122 = vmatpush.msrb.mxu2 %v1931_v59 }
 0x248   :  { %1592 = vrcp.f32 %v645_v49  ;;  %v750_v10 = vand.u32 2147483648, %v645_v49  ;;  %vm744_vm13 = vweird.f32 %v645_v49 }
 0x249   :  { %1123 = vmatpush.msrb.mxu2 %v1925_v54  ;;  %1594 = vrcp.f32 %v1966_v27  ;;  %v748_v54 = vand.u32 2147483647, %v645_v49 }
 0x24a   :  { %v751_v0 = vor.u32 1.1754944e-38, %v750_v10 }
 0x24b   :  { %vm749_vm15 = vcmp.eq.f32.partialorder %v748_v54, 8.507059e+37 }
 0x24e   :  { %v1593_v52 = vpop.eup %1592 }
 0x24f   :  { %v740_v33 = vmul.f32 %v1593_v52, %v645_v49  ;;  %v648_v53 = vpop.xlane.xlu0 %647  ;;  %v1972_v30 = vpop.eup %1594  ;;  %vm745_vm12 = vweird.f32 %v1593_v52 }
 0x250   :  { %1596 = vrcp.f32 %v648_v53  ;;  %v725_v59 = vmul.f32 %v1972_v30, %v1966_v27  ;;  %vm746_vm14 = vmor %vm744_vm13, %vm745_vm12  ;;  %v765_v1 = vand.u32 2147483648, %v648_v53  ;;  %v763_v2 = vand.u32 2147483647, %v648_v53 }
 0x251   :  { %v741_v55 = vsub.f32 1.0, %v740_v33  ;;  %vm759_vm1 = vweird.f32 %v648_v53  ;;  %vm730_vm5 = vweird.f32 %v1972_v30 }
 0x252   :  { %v726_v63 = vsub.f32 1.0, %v725_v59  ;;  %v766_v7 = vor.u32 1.1754944e-38, %v765_v1  ;;  %vm764_vm4 = vcmp.eq.f32.partialorder %v763_v2, 8.507059e+37  ;;  %vm1990_vm7 = vmor %vm729_vm6, %vm730_vm5 }
 0x253   :  { %v742_v12 = vmul.f32 %v1593_v52, %v741_v55 }
 0x254   :  { %v727_v56 = vmul.f32 %v1972_v30, %v726_v63 }
 0x255   :  { %v743_v38 = vadd.f32 %v1593_v52, %v742_v12 }
 0x256   :  { %v1597_v58 = vpop.eup %1596  ;;  %v728_v19 = vadd.f32 %v1972_v30, %v727_v56 }
 0x257   :  { %v755_v60 = vmul.f32 %v1597_v58, %v648_v53  ;;  %v1976_v48 = vpop.xlane.xlu0 %650  ;;  %v747_v61 = vsel %vm746_vm14, %v1593_v52, %v743_v38  ;;  %vm760_vm0 = vweird.f32 %v1597_v58 }
 0x258   :  { %1598 = vrcp.f32 %v1976_v48  ;;  %v752_v15 = vsel %vm749_vm15, %v751_v0, %v747_v61  ;;  %vm761_vm3 = vmor %vm759_vm1, %vm760_vm0  ;;  %v780_v23 = vand.u32 2147483648, %v1976_v48  ;;  %v732_v35 = vsel %vm1990_vm7, %v1972_v30, %v728_v19 }
 0x259   :  { %v756_v62 = vsub.f32 1.0, %v755_v60  ;;  %v923_v8 = vmul.f32 0.0625, %v752_v15  ;;  %vm774_vm10 = vweird.f32 %v1976_v48  ;;  %v778_v47 = vand.u32 2147483647, %v1976_v48 }
 0x25a   :  { %v737_v27 = vsel %vm734_vm9, %v736_v44, %v732_v35  ;;  %v781_v33 = vor.u32 1.1754944e-38, %v780_v23 }
 0x25b   :  { %v757_v36 = vmul.f32 %v1597_v58, %v756_v62  ;;  %v995_v21 = vperm.slane %v923_v8, %v1952_v29  ;;  %vm779_vm14 = vcmp.eq.f32.partialorder %v778_v47, 8.507059e+37  ;;  %v922_v60 = vmul.f32 0.0625, %v737_v27 }
 0x25d   :  { %v758_v4 = vadd.f32 %v1597_v58, %v757_v36 }
 0x25e   :  { %v1599_v5 = vpop.eup %1598 }
 0x25f   :  { %v762_v34 = vsel %vm761_vm3, %v1597_v58, %v758_v4  ;;  %v770_v9 = vmul.f32 %v1599_v5, %v1976_v48  ;;  %v639_v11 = vpop.xlane.xlu0 %638  ;;  %v654_v18 = vpop.xlane.xlu1 %653  ;;  %vm775_vm8 = vweird.f32 %v1599_v5 }
 0x260   :  { %v767_v14 = vsel %vm764_vm4, %v766_v7, %v762_v34  ;;  %1600 = vrcp.f32 %v639_v11  ;;  %vm2007_vm12 = vmor %vm774_vm10, %vm775_vm8  ;;  %v718_v30 = vand.u32 2147483647, %v639_v11  ;;  %v720_v12 = vand.u32 2147483648, %v639_v11  ;;  %v2014_v7 = vpop.f32.mrf.mxu2 }
 0x261   :  { %v924_v16 = vmul.f32 0.0625, %v767_v14  ;;  %v771_v17 = vsub.f32 1.0, %v770_v9  ;;  %1602 = vrcp.f32 %v654_v18  ;;  %v793_v59 = vand.u32 2147483647, %v654_v18 }
 0x262   :  { %v795_v10 = vand.u32 2147483648, %v654_v18  ;;  %vm714_vm0 = vweird.f32 %v639_v11  ;;  %vm719_vm3 = vcmp.eq.f32.partialorder %v718_v30, 8.507059e+37  ;;  %v721_v63 = vor.u32 1.1754944e-38, %v720_v12 }
 0x263   :  { %v772_v41 = vmul.f32 %v1599_v5, %v771_v17  ;;  %v996_v43 = vperm.slane %v924_v16, %v1957_v24  ;;  %vm789_vm4 = vweird.f32 %v654_v18  ;;  %vm794_vm6 = vcmp.eq.f32.partialorder %v793_v59, 8.507059e+37 }
 0x264   :  { %v796_v36 = vor.u32 1.1754944e-38, %v795_v10  ;;  %v969_v16 = vperm.slane %v922_v60, %v1957_v24 }
 0x265   :  { %v997_v26 = vsel %vm942_vm11, %v996_v43, %v995_v21  ;;  %v773_v39 = vadd.f32 %v1599_v5, %v772_v41 }
 0x266   :  { %v1601_v25 = vpop.eup %1600  ;;  %1495 = vmatmul.msk.f32.vlgmr.msra.gmra.mxu2 %vm534_vm2, %v997_v26 }
 0x267   :  { %v1603_v28 = vpop.eup %1602  ;;  %v710_v45 = vmul.f32 %v1601_v25, %v639_v11  ;;  %v2002_v31 = vpop.xlane.xlu1 %656  ;;  %v777_v55 = vsel %vm2007_vm12, %v1599_v5, %v773_v39  ;;  %vm715_vm13 = vweird.f32 %v1601_v25 }
 0x268   :  { %v785_v49 = vmul.f32 %v1603_v28, %v654_v18  ;;  %1604 = vrcp.f32 %v2002_v31  ;;  %vm790_vm15 = vweird.f32 %v1603_v28  ;;  %v782_v48 = vsel %vm779_vm14, %v781_v33, %v777_v55  ;;  %vm716_vm1 = vmor %vm714_vm0, %vm715_vm13 }
 0x269   :  { %v711_v53 = vsub.f32 1.0, %v710_v45  ;;  %vm791_vm5 = vmor %vm789_vm4, %vm790_vm15  ;;  %v925_v4 = vmul.f32 0.0625, %v782_v48  ;;  %v810_v21 = vand.u32 2147483648, %v2002_v31  ;;  %vm804_vm8 = vweird.f32 %v2002_v31 }
 0x26a   :  { %v786_v38 = vsub.f32 1.0, %v785_v49  ;;  %v808_v22 = vand.u32 2147483647, %v2002_v31 }
 0x26b   :  { %v712_v58 = vmul.f32 %v1601_v25, %v711_v53  ;;  %v1022_v17 = vperm.slane %v925_v4, %v1952_v29  ;;  %v811_v35 = vor.u32 1.1754944e-38, %v810_v21 }
 0x26c   :  { %v787_v54 = vmul.f32 %v1603_v28, %v786_v38  ;;  %vm809_vm10 = vcmp.eq.f32.partialorder %v808_v22, 8.507059e+37 }
 0x26d   :  { %v713_v61 = vadd.f32 %v1601_v25, %v712_v58 }
 0x26e   :  { %v1605_v62 = vpop.eup %1604  ;;  %v788_v0 = vadd.f32 %v1603_v28, %v787_v54 }
 0x26f   :  { %v717_v1 = vsel %vm716_vm1, %v1601_v25, %v713_v61  ;;  %v800_v2 = vmul.f32 %v1605_v62, %v2002_v31  ;;  %v660_v15 = vpop.xlane.xlu2 %659  ;;  %vm805_vm7 = vweird.f32 %v1605_v62 }
 0x270   :  { %v722_v5 = vsel %vm719_vm3, %v721_v63, %v717_v1  ;;  %v792_v56 = vsel %vm791_vm5, %v1603_v28, %v788_v0  ;;  %1606 = vrcp.f32 %v660_v15  ;;  %vm806_vm9 = vmor %vm804_vm8, %vm805_vm7  ;;  %v825_v39 = vand.u32 2147483648, %v660_v15  ;;  %v2029_v28 = vpop.f32.mrf.mxu2 }
 0x271   :  { %v921_v8 = vmul.f32 0.0625, %v722_v5  ;;  %v797_v34 = vsel %vm794_vm6, %v796_v36, %v792_v56  ;;  %v801_v9 = vsub.f32 1.0, %v800_v2  ;;  %v823_v45 = vand.u32 2147483647, %v660_v15 }
 0x272   :  { %v926_v11 = vmul.f32 0.0625, %v797_v34  ;;  %vm819_vm13 = vweird.f32 %v660_v15  ;;  %v826_v49 = vor.u32 1.1754944e-38, %v825_v39 }
 0x273   :  { %v802_v14 = vmul.f32 %v1605_v62, %v801_v9  ;;  %v968_v18 = vperm.slane %v921_v8, %v1952_v29  ;;  %vm824_vm15 = vcmp.eq.f32.partialorder %v823_v45, 8.507059e+37  ;;  %v2048_v9 = vshrl.u32 %v937_v42, 7 }
 0x274   :  { %v1023_v19 = vperm.slane %v926_v11, %v1957_v24 }
 0x275   :  { %v803_v46 = vadd.f32 %v1605_v62, %v802_v14  ;;  %v970_v20 = vsel %vm942_vm11, %v969_v16, %v968_v18  ;;  %1543 = vset.pattern.permute.xlu2 %v2048_v9  ;;  %v2052_v18 = vadd.s32 8, %v2048_v9  ;;  %1545 = vset.pattern.permute.xlu1 %v2048_v9 }
 0x276   :  { %v1607_v41 = vpop.eup %1606  ;;  %1494 = vmatmul.msk.f32.vlgmr.msra.gmra.mxu1 %vm534_vm2, %v970_v20  ;;  %v1024_v43 = vsel %vm942_vm11, %v1023_v19, %v1022_v17 }
 0x277   :  { %v815_v23 = vmul.f32 %v1607_v41, %v660_v15  ;;  %1496 = vmatmul.msk.f32.vlgmr.msra.gmra.mxu3 %vm534_vm2, %v1024_v43  ;;  %v807_v26 = vsel %vm806_vm9, %v1605_v62, %v803_v46  ;;  %vm820_vm12 = vweird.f32 %v1607_v41  ;;  %1544 = vset.pattern.permute.xlu0 %v2052_v18 }
 0x278   :  { %1149 = vmatpush.msra.mxu3 %v1942_v37  ;;  %v812_v47 = vsel %vm809_vm10, %v811_v35, %v807_v26  ;;  %vm821_vm14 = vmor %vm819_vm13, %vm820_vm12  ;;  %v2033_v55 = vpop.f32.mrf.mxu2 }
 0x279   :  { %v816_v25 = vsub.f32 1.0, %v815_v23  ;;  %v927_v27 = vmul.f32 0.0625, %v812_v47 }
 0x27a   :  { %1150 = vmatpush.msra.mxu3 %v1937_v50 }
 0x27b   :  { %v817_v44 = vmul.f32 %v1607_v41, %v816_v25  ;;  %v1049_v53 = vperm.slane %v927_v27, %v1952_v29 }
 0x27d   :  { %v818_v31 = vadd.f32 %v1607_v41, %v817_v44 }
 0x27f   :  { %v822_v52 = vsel %vm821_vm14, %v1607_v41, %v818_v31 }
 0x280   :  { %v827_v37 = vsel %vm824_vm15, %v826_v49, %v822_v52  ;;  %v2037_v58 = vpop.f32.mrf.mxu2 }
 0x281   :  { %v928_v33 = vmul.f32 0.0625, %v827_v37 }
 0x283   :  { %v1050_v50 = vperm.slane %v928_v33, %v1957_v24 }
 0x285   :  { %v1051_v30 = vsel %vm942_vm11, %v1050_v50, %v1049_v53 }
 0x286   :  { %1497 = vmatmul.msk.f32.vlgmr.msrb.gmra.mxu3 %vm534_vm2, %v1051_v30 }
 0x287   :  { %v669_v12 = vpop.xlane.xlu2 %668 }
 0x288   :  { %1608 = vrcp.f32 %v669_v12  ;;  %v870_v62 = vand.u32 2147483648, %v669_v12  ;;  %vm864_vm1 = vweird.f32 %v669_v12  ;;  %v868_v1 = vand.u32 2147483647, %v669_v12  ;;  %v2044_v2 = vpop.f32.mrf.mxu2 }
 0x28a   :  { %v871_v5 = vor.u32 1.1754944e-38, %v870_v62  ;;  %vm869_vm5 = vcmp.eq.f32.partialorder %v868_v1, 8.507059e+37 }
 0x28e   :  { %v1609_v38 = vpop.eup %1608 }
 0x28f   :  { %v860_v59 = vmul.f32 %v1609_v38, %v669_v12  ;;  %v672_v10 = vpop.xlane.xlu0 %671  ;;  %vm865_vm0 = vweird.f32 %v1609_v38 }
 0x290   :  { %1610 = vrcp.f32 %v672_v10  ;;  %vm866_vm3 = vmor %vm864_vm1, %vm865_vm0  ;;  %v885_v56 = vand.u32 2147483648, %v672_v10  ;;  %v883_v34 = vand.u32 2147483647, %v672_v10  ;;  %vm879_vm6 = vweird.f32 %v672_v10  ;;  %v2061_v35 = vpop.f32.mrf.mxu2 }
 0x291   :  { %v861_v54 = vsub.f32 1.0, %v860_v59 }
 0x292   :  { %v886_v17 = vor.u32 1.1754944e-38, %v885_v56  ;;  %vm884_vm8 = vcmp.eq.f32.partialorder %v883_v34, 8.507059e+37 }
 0x293   :  { %v862_v60 = vmul.f32 %v1609_v38, %v861_v54 }
 0x295   :  { %v863_v61 = vadd.f32 %v1609_v38, %v862_v60 }
 0x296   :  { %v1611_v48 = vpop.eup %1610 }
 0x297   :  { %v875_v63 = vmul.f32 %v1611_v48, %v672_v10  ;;  %v2039_v0 = vpop.xlane.xlu0 %662  ;;  %v867_v4 = vsel %vm866_vm3, %v1609_v38, %v863_v61  ;;  %vm880_vm4 = vweird.f32 %v1611_v48 }
 0x298   :  { %1612 = vrcp.f32 %v2039_v0  ;;  %v2042_v36 = vpop.xlane.xlu1 %674  ;;  %v872_v11 = vsel %vm869_vm5, %v871_v5, %v867_v4  ;;  %vm881_vm7 = vmor %vm879_vm6, %vm880_vm4  ;;  %v838_v31 = vand.u32 2147483647, %v2039_v0  ;;  %v840_v49 = vand.u32 2147483648, %v2039_v0  ;;  %v2091_v5 = vpop.f32.mrf.mxu2 }
 0x299   :  { %v876_v15 = vsub.f32 1.0, %v875_v63  ;;  %1614 = vrcp.f32 %v2042_v36  ;;  %v931_v20 = vmul.f32 0.0625, %v872_v11  ;;  %v898_v52 = vand.u32 2147483647, %v2042_v36 }
 0x29a   :  { %v900_v50 = vand.u32 2147483648, %v2042_v36  ;;  %vm894_vm12 = vweird.f32 %v2042_v36  ;;  %vm834_vm13 = vweird.f32 %v2039_v0  ;;  %vm2073_vm14 = vcmp.eq.f32.partialorder %v838_v31, 8.507059e+37 }
 0x29b   :  { %v877_v8 = vmul.f32 %v1611_v48, %v876_v15  ;;  %v1103_v45 = vperm.slane %v931_v20, %v1952_v29  ;;  %v841_v60 = vor.u32 1.1754944e-38, %v840_v49  ;;  %vm899_vm1 = vcmp.eq.f32.partialorder %v898_v52, 8.507059e+37 }
 0x29c   :  { %v901_v63 = vor.u32 1.1754944e-38, %v900_v50 }
 0x29d   :  { %v878_v14 = vadd.f32 %v1611_v48, %v877_v8 }
 0x29e   :  { %v1613_v16 = vpop.eup %1612 }
 0x29f   :  { %v1615_v19 = vpop.eup %1614  ;;  %v882_v46 = vsel %vm881_vm7, %v1611_v48, %v878_v14  ;;  %v830_v42 = vmul.f32 %v1613_v16, %v2039_v0  ;;  %vm835_vm10 = vweird.f32 %v1613_v16 }
 0x2a0   :  { %v887_v41 = vsel %vm884_vm8, %v886_v17, %v882_v46  ;;  %v890_v21 = vmul.f32 %v1615_v19, %v2042_v36  ;;  %v678_v43 = vpop.xlane.xlu2 %677  ;;  %v2058_v22 = vpop.xlane.xlu1 %665  ;;  %vm895_vm9 = vweird.f32 %v1615_v19  ;;  %vm2082_vm0 = vmor %vm834_vm13, %vm835_vm10  ;;  %vm1381_vm13 = vcmask 1044484  }
 0x2a1   :  { %v932_v23 = vmul.f32 0.0625, %v887_v41  ;;  %v831_v26 = vsub.f32 1.0, %v830_v42  ;;  %1616 = vrcp.f32 %v678_v43  ;;  %vm2077_vm15 = vmor %vm894_vm12, %vm895_vm9  ;;  %v915_v0 = vand.u32 2147483648, %v678_v43 }
 0x2a2   :  { %v891_v25 = vsub.f32 1.0, %v890_v21  ;;  %1618 = vrcp.f32 %v2058_v22  ;;  %v913_v15 = vand.u32 2147483647, %v678_v43  ;;  %v855_v4 = vand.u32 2147483648, %v2058_v22 }
 0x2a3   :  { %v832_v39 = vmul.f32 %v1613_v16, %v831_v26  ;;  %v1104_v47 = vperm.slane %v932_v23, %v1957_v24  ;;  %v853_v34 = vand.u32 2147483647, %v2058_v22  ;;  %vm909_vm5 = vweird.f32 %v678_v43 }
 0x2a4   :  { %v892_v44 = vmul.f32 %v1615_v19, %v891_v25  ;;  %vm849_vm7 = vweird.f32 %v2058_v22  ;;  %vm914_vm8 = vcmp.eq.f32.partialorder %v913_v15, 8.507059e+37  ;;  %v856_v42 = vor.u32 1.1754944e-38, %v855_v4 }
 0x2a5   :  { %v1105_v37 = vsel %vm942_vm11, %v1104_v47, %v1103_v45  ;;  %v833_v53 = vadd.f32 %v1613_v16, %v832_v39  ;;  %vm854_vm10 = vcmp.eq.f32.partialorder %v853_v34, 8.507059e+37  ;;  %v2102_v47 = vpop.f32.mrf.mxu2  ;;  %vm1379_vm12 = vcmask 1043459  }
 0x2a6   :  { %v893_v27 = vadd.f32 %v1615_v19, %v892_v44  ;;  %1499 = vmatmul.msk.f32.vlgmr.msrb.gmra.mxu2 %vm534_vm2, %v1105_v37 }
 0x2a7   :  { %v1617_v33 = vpop.eup %1616  ;;  %v837_v62 = vsel %vm2082_vm0, %v1613_v16, %v833_v53  ;;  %v916_v16 = vor.u32 1.1754944e-38, %v915_v0  ;;  %vm1387_vm0 = vcmask 1047559  }
 0x2a8   :  { %v1619_v30 = vpop.eup %1618  ;;  %v905_v12 = vmul.f32 %v1617_v33, %v678_v43  ;;  %v897_v48 = vsel %vm2077_vm15, %v1615_v19, %v893_v27  ;;  %vm910_vm3 = vweird.f32 %v1617_v33  ;;  %v842_v11 = vsel %vm2073_vm14, %v841_v60, %v837_v62  ;;  %v1620_v60 = vld [vmem:[%s2187_s2] sm:$0x7] }
 0x2a9   :  { %v845_v10 = vmul.f32 %v1619_v30, %v2058_v22  ;;  %v902_v56 = vsel %vm899_vm1, %v901_v63, %v897_v48  ;;  %vm850_vm4 = vweird.f32 %v1619_v30  ;;  %vm911_vm6 = vmor %vm909_vm5, %vm910_vm3  ;;  %v929_v20 = vmul.f32 0.0625, %v842_v11 }
 0x2aa   :  { %v906_v61 = vsub.f32 1.0, %v905_v12  ;;  %v933_v19 = vmul.f32 0.0625, %v902_v56  ;;  %vm851_vm9 = vmor %vm849_vm7, %vm850_vm4  ;;  %v2119_v48 = vperm.slane %v1620_v60, 2  ;;  %vm1383_vm14 = vcmask 1045509  }
 0x2ab   :  { %v846_v1 = vsub.f32 1.0, %v845_v10  ;;  %v1076_v44 = vperm.slane %v929_v20, %v1952_v29  ;;  %vm1385_vm15 = vcmask 1046534  }
 0x2ac   :  { %v907_v36 = vmul.f32 %v1617_v33, %v906_v61  ;;  %v1130_v39 = vperm.slane %v933_v19, %v1952_v29  ;;  %v248_v62 = vadd.f32 %v2119_v48, %v1945_v6  ;;  %v251_v63 = vadd.f32 %v2119_v48, %v1949_v13  ;;  %v1540_v6 = vld [vmem:[%s2188_s3 + $0x38] sm:$0xff] }
 0x2ad   :  { %v847_v8 = vmul.f32 %v1619_v30, %v846_v1  ;;  %v2107_v49 = vpop.f32.mrf.mxu2  ;;  %1439 = vmatpush.bf16.msrb.mxu0 %v1540_v6  ;;  %v254_v11 = vadd.f32 %v2119_v48, %v1954_v32 }
 0x2ae   :  { %v908_v14 = vadd.f32 %v1617_v33, %v907_v36 }
 0x2af   :  { %v848_v17 = vadd.f32 %v1619_v30, %v847_v8 }
 0x2b0   :  { %v912_v46 = vsel %vm911_vm6, %v1617_v33, %v908_v14 }
 0x2b1   :  { %v917_v41 = vsel %vm914_vm8, %v916_v16, %v912_v46  ;;  %v852_v21 = vsel %vm851_vm9, %v1619_v30, %v848_v17 }
 0x2b2   :  { %v934_v23 = vmul.f32 0.0625, %v917_v41  ;;  %v857_v26 = vsel %vm854_vm10, %v856_v42, %v852_v21 }
 0x2b3   :  { %v930_v25 = vmul.f32 0.0625, %v857_v26  ;;  %v1539_v26 = vld [vmem:[%s2188_s3 + $0x30] sm:$0xff] }
 0x2b4   :  { %v1131_v43 = vperm.slane %v934_v23, %v1957_v24  ;;  %1440 = vmatpush.bf16.msrb.mxu0 %v1539_v26 }
 0x2b5   :  { %v1077_v22 = vperm.slane %v930_v25, %v1957_v24 }
 0x2b6   :  { %v1132_v45 = vsel %vm942_vm11, %v1131_v43, %v1130_v39 }
 0x2b7   :  { %v1078_v31 = vsel %vm942_vm11, %v1077_v22, %v1076_v44  ;;  %1500 = vmatmul.msk.f32.vlgmr.msra.gmra.mxu3 %vm534_vm2, %v1132_v45  ;;  %v260_v44 = vadd.f32 %v2119_v48, %v1970_v57  ;;  %v263_v22 = vadd.f32 %v2119_v48, %v1979_v3  ;;  %v272_v3 = vadd.f32 %v2119_v48, %v2029_v28 }
 0x2b8   :  { %1498 = vmatmul.msk.f32.vlgmr.msrb.gmra.mxu1 %vm534_vm2, %v1078_v31  ;;  %vm1375_vm2 = vcmask 1041409   ;;  %vm1377_vm11 = vcmask 1042434  }
 0x2c9   :  { %v963_v27 = vpop.f32.mrf.mxu2 }
 0x2ca   :  { %v1155_v52 = vperm.slane %v963_v27, 0  ;;  %v1537_v27 = vld [vmem:[%s2188_s3 + $0x20] sm:$0xff] }
 0x2cc   :  { %1166 = vperm.xlu0 %1544, %v1155_v52   ;;  %1160 = vperm.xlu2 %1543, %v1155_v52  }
 0x2d4   :  { %1546 = vset.pattern.permute.xlu2 %v2052_v18  ;;  %1549 = vset.pattern.permute.xlu0 %v2048_v9 }
 0x2e9   :  { %v1017_v37 = vpop.f32.mrf.mxu2 }
 0x2ea   :  { %v1181_v53 = vperm.slane %v1017_v37, 0 }
 0x2f3   :  { %v990_v29 = vpop.f32.mrf.mxu1 }
 0x2f4   :  { %v1168_v24 = vperm.slane %v990_v29, 0 }
 0x2f6   :  { %1179 = vperm.xlu2 %1546, %v1168_v24   ;;  %1173 = vperm.xlu1 %1545, %v1168_v24  }
 0x2fa   :  { %v1044_v33 = vpop.f32.mrf.mxu3 }
 0x2fb   :  { %v1194_v12 = vperm.slane %v1044_v33, 0 }
 0x2fe   :  { %1547 = vset.pattern.permute.xlu2 %v2048_v9  ;;  %1548 = vset.pattern.permute.xlu1 %v2052_v18 }
 0x306   :  { %1186 = vperm.xlu2 %1547, %v1181_v53   ;;  %1192 = vperm.xlu1 %1548, %v1181_v53  }
 0x309   :  { %v1071_v50 = vpop.f32.mrf.mxu3 }
 0x30a   :  { %v1207_v30 = vperm.slane %v1071_v50, 0 }
 0x30c   :  { %1212 = vperm.xlu0 %1549, %v1207_v30  }
 0x30e   :  { %1205 = vperm.xlu1 %1548, %v1194_v12   ;;  %1199 = vperm.xlu2 %1547, %v1194_v12  }
 0x314   :  { %1552 = vset.pattern.permute.xlu0 %v2052_v18 }
 0x316   :  { %1550 = vset.pattern.permute.xlu2 %v2052_v18  ;;  %1551 = vset.pattern.permute.xlu1 %v2048_v9 }
 0x31e   :  { %1218 = vperm.xlu2 %1550, %v1207_v30   ;;  %v275_v30 = vadd.f32 %v2119_v48, %v2033_v55 }
 0x326   :  { %v1161_v61 = vpop.permute.xlu2 %1160 }
 0x327   :  { %v1259_v1 = vmul.f32 %v1161_v61, %v248_v62 }
 0x329   :  { %v1125_v38 = vpop.f32.mrf.mxu2 }
 0x32a   :  { %v1233_v59 = vperm.slane %v1125_v38, 0 }
 0x32c   :  { %1244 = vperm.xlu0 %1552, %v1233_v59  }
 0x335   :  { %v1098_v10 = vpop.f32.mrf.mxu1 }
 0x336   :  { %v1220_v54 = vperm.slane %v1098_v10, 0 }
 0x338   :  { %1231 = vperm.xlu2 %1550, %v1220_v54   ;;  %1225 = vperm.xlu1 %1551, %v1220_v54   ;;  %v269_v54 = vadd.f32 %v2119_v48, %v2014_v7 }
 0x33a   :  { %v1152_v4 = vpop.f32.mrf.mxu3 }
 0x33b   :  { %v1246_v56 = vperm.slane %v1152_v4, 0 }
 0x33e   :  { %v1167_v0 = vpop.permute.xlu0 %1166 }
 0x33f   :  { %v1260_v36 = vmul.f32 %v1167_v0, %v251_v63 }
 0x340   :  { %1553 = vset.pattern.permute.xlu2 %v2048_v9  ;;  %1238 = vperm.xlu1 %1551, %v1233_v59   ;;  %v257_v9 = vadd.f32 %v2119_v48, %v1964_v51  ;;  %v1538_v51 = vld [vmem:[%s2188_s3 + $0x28] sm:$0xff]  ;;  %v266_v59 = vadd.f32 %v2119_v48, %v2000_v40 }
 0x341   :  { %v1275_v15 = vadd.f32 %v1260_v36, %v1259_v1  ;;  %1441 = vmatpush.bf16.msrb.mxu0 %v1538_v51  ;;  %v1535_v51 = vld [vmem:[%s2188_s3 + $0x10] sm:$0xff] }
 0x343   :  { %v1276_v8 = vrot.slane %v1275_v15, 4 }
 0x345   :  { %v1277_v34 = vadd.f32 %v1276_v8, %v1275_v15  ;;  %1442 = vmatpush.bf16.msrb.mxu0 %v1537_v27 }
 0x347   :  { %v1278_v14 = vrot.slane %v1277_v34, 2 }
 0x348   :  { %1251 = vperm.xlu2 %1553, %v1246_v56   ;;  %1554 = vset.pattern.permute.xlu1 %v2052_v18 }
 0x349   :  { %v1279_v46 = vadd.f32 %v1278_v14, %v1277_v34 }
 0x34b   :  { %v1280_v41 = vrot.slane %v1279_v46, 1 }
 0x34d   :  { %v1281_v25 = vadd.f32 %v1280_v41, %v1279_v46 }
 0x34f   :  { %v1331_v45 = vpack.c.bf16 %v1281_v25, %v1281_v25 }
 0x350   :  { %1257 = vperm.xlu1 %1554, %v1246_v56   ;;  %v1180_v13 = vpop.permute.xlu2 %1179 }
 0x351   :  { %v1262_v17 = vmul.f32 %v1180_v13, %v257_v9  ;;  %v1367_v33 = vunpack.c.l.b16 %v1331_v45 }
 0x360   :  { %v1187_v18 = vpop.permute.xlu2 %1186 }
 0x361   :  { %v1263_v29 = vmul.f32 %v1187_v18, %v260_v44  ;;  %v281_v44 = vadd.f32 %v2119_v48, %v2044_v2 }
 0x368   :  { %v1174_v16 = vpop.permute.xlu1 %1173  ;;  %v1200_v39 = vpop.permute.xlu2 %1199 }
 0x369   :  { %v1261_v19 = vmul.f32 %v1174_v16, %v254_v11  ;;  %v1265_v0 = vmul.f32 %v1200_v39, %v266_v59 }
 0x36b   :  { %v1282_v42 = vadd.f32 %v1262_v17, %v1261_v19 }
 0x36d   :  { %v1283_v20 = vrot.slane %v1282_v42, 4 }
 0x36f   :  { %v1284_v21 = vadd.f32 %v1283_v20, %v1282_v42 }
 0x371   :  { %v1285_v23 = vrot.slane %v1284_v21, 2 }
 0x373   :  { %v1286_v32 = vadd.f32 %v1285_v23, %v1284_v21 }
 0x375   :  { %v1287_v43 = vrot.slane %v1286_v32, 1 }
 0x377   :  { %v1288_v31 = vadd.f32 %v1287_v43, %v1286_v32  ;;  %v1536_v32 = vld [vmem:[%s2188_s3 + $0x18] sm:$0xff]  ;;  %v278_v43 = vadd.f32 %v2119_v48, %v2037_v58  ;;  %v1534_v58 = vld [vmem:[%s2188_s3 + $0x8] sm:$0xff] }
 0x378   :  { %v1193_v52 = vpop.permute.xlu1 %1192  ;;  %v1219_v57 = vpop.permute.xlu2 %1218  ;;  %1443 = vmatpush.bf16.msrb.mxu0 %v1536_v32 }
 0x379   :  { %v1332_v24 = vpack.c.bf16 %v1288_v31, %v1288_v31  ;;  %v1264_v37 = vmul.f32 %v1193_v52, %v263_v22  ;;  %v1268_v60 = vmul.f32 %v1219_v57, %v275_v30 }
 0x37b   :  { %v1368_v53 = vunpack.c.l.b16 %v1332_v24  ;;  %v1289_v50 = vadd.f32 %v1264_v37, %v1263_v29  ;;  %v284_v24 = vadd.f32 %v2119_v48, %v2061_v35  ;;  %v287_v37 = vadd.f32 %v2119_v48, %v2091_v5 }
 0x37c   :  { %1444 = vmatpush.bf16.msrb.mxu0 %v1535_v51 }
 0x37d   :  { %v1376_v12 = vsel %vm1375_vm2, %v1368_v53, %v1367_v33  ;;  %v1290_v38 = vrot.slane %v1289_v50, 4 }
 0x37e   :  { %v1213_v10 = vpop.permute.xlu0 %1212 }
 0x37f   :  { %v1291_v61 = vadd.f32 %v1290_v38, %v1289_v50  ;;  %v1267_v62 = vmul.f32 %v1213_v10, %v272_v3  ;;  %v1533_v3 = vld [vmem:[%s2188_s3] sm:$0xff] }
 0x380   :  { %v1206_v63 = vpop.permute.xlu1 %1205  ;;  %1445 = vmatpush.bf16.msrb.mxu0 %v1534_v58 }
 0x381   :  { %v1292_v1 = vrot.slane %v1291_v61, 2  ;;  %v1303_v36 = vadd.f32 %v1268_v60, %v1267_v62  ;;  %v1266_v28 = vmul.f32 %v1206_v63, %v269_v54 }
 0x383   :  { %v1293_v15 = vadd.f32 %v1292_v1, %v1291_v61  ;;  %v1304_v4 = vrot.slane %v1303_v36, 4  ;;  %v1296_v55 = vadd.f32 %v1266_v28, %v1265_v0  ;;  %v290_v1 = vadd.f32 %v2119_v48, %v2102_v47 }
 0x384   :  { %1446 = vmatpush.bf16.msrb.mxu0 %v1533_v3 }
 0x385   :  { %v1294_v56 = vrot.slane %v1293_v15, 1  ;;  %v1305_v6 = vadd.f32 %v1304_v4, %v1303_v36  ;;  %v1297_v8 = vrot.slane %v1296_v55, 4  ;;  %v293_v36 = vadd.f32 %v2119_v48, %v2107_v49  ;;  %v1555_v48 = vld [vmem:[%s2189_s4] ss:$0 sm:$0xff] }
 0x387   :  { %v1295_v13 = vadd.f32 %v1294_v56, %v1293_v15  ;;  %v1306_v40 = vrot.slane %v1305_v6, 2  ;;  %v1298_v34 = vadd.f32 %v1297_v8, %v1296_v55 }
 0x389   :  { %v1333_v11 = vpack.c.bf16 %v1295_v13, %v1295_v13  ;;  %v1307_v9 = vadd.f32 %v1306_v40, %v1305_v6  ;;  %v1299_v7 = vrot.slane %v1298_v34, 2 }
 0x38b   :  { %v1369_v14 = vunpack.c.l.b16 %v1333_v11  ;;  %v1308_v16 = vrot.slane %v1307_v9, 1  ;;  %v1300_v17 = vadd.f32 %v1299_v7, %v1298_v34 }
 0x38d   :  { %v1378_v19 = vsel %vm1377_vm11, %v1369_v14, %v1376_v12  ;;  %v1309_v18 = vadd.f32 %v1308_v16, %v1307_v9  ;;  %v1301_v46 = vrot.slane %v1300_v17, 1 }
 0x38f   :  { %v1302_v42 = vadd.f32 %v1301_v46, %v1300_v17  ;;  %v1335_v20 = vpack.c.bf16 %v1309_v18, %v1309_v18 }
 0x391   :  { %v1334_v41 = vpack.c.bf16 %v1302_v42, %v1302_v42  ;;  %v1371_v23 = vunpack.c.l.b16 %v1335_v20 }
 0x392   :  { %v1232_v39 = vpop.permute.xlu2 %1231 }
 0x393   :  { %v1370_v21 = vunpack.c.l.b16 %v1334_v41  ;;  %v1270_v45 = vmul.f32 %v1232_v39, %v281_v44 }
 0x395   :  { %v1380_v26 = vsel %vm1379_vm12, %v1370_v21, %v1378_v19 }
 0x396   :  { %v1382_v25 = vsel %vm1381_vm13, %v1371_v23, %v1380_v26 }
 0x39e   :  { %v1245_v29 = vpop.permute.xlu0 %1244 }
 0x39f   :  { %v1272_v50 = vmul.f32 %v1245_v29, %v287_v37 }
 0x3a2   :  { %v1252_v0 = vpop.permute.xlu2 %1251 }
 0x3a3   :  { %v1273_v4 = vmul.f32 %v1252_v0, %v290_v1 }
 0x3aa   :  { %v1226_v22 = vpop.permute.xlu1 %1225 }
 0x3ab   :  { %v1269_v31 = vmul.f32 %v1226_v22, %v278_v43 }
 0x3ad   :  { %v1310_v27 = vadd.f32 %v1270_v45, %v1269_v31 }
 0x3af   :  { %v1311_v52 = vrot.slane %v1310_v27, 4 }
 0x3b1   :  { %v1312_v33 = vadd.f32 %v1311_v52, %v1310_v27 }
 0x3b2   :  { %v1239_v53 = vpop.permute.xlu1 %1238 }
 0x3b3   :  { %v1313_v2 = vrot.slane %v1312_v33, 2  ;;  %v1271_v57 = vmul.f32 %v1239_v53, %v284_v24 }
 0x3b5   :  { %v1314_v30 = vadd.f32 %v1313_v2, %v1312_v33  ;;  %v1317_v12 = vadd.f32 %v1272_v50, %v1271_v57 }
 0x3b7   :  { %v1315_v35 = vrot.slane %v1314_v30, 1  ;;  %v1318_v38 = vrot.slane %v1317_v12, 4 }
 0x3b9   :  { %v1316_v5 = vadd.f32 %v1315_v35, %v1314_v30  ;;  %v1319_v59 = vadd.f32 %v1318_v38, %v1317_v12 }
 0x3bb   :  { %v1336_v10 = vpack.c.bf16 %v1316_v5, %v1316_v5  ;;  %v1320_v54 = vrot.slane %v1319_v59, 2 }
 0x3bd   :  { %v1372_v60 = vunpack.c.l.b16 %v1336_v10  ;;  %v1321_v61 = vadd.f32 %v1320_v54, %v1319_v59 }
 0x3bf   :  { %v1322_v62 = vrot.slane %v1321_v61, 1  ;;  %v1384_v63 = vsel %vm1383_vm14, %v1372_v60, %v1382_v25 }
 0x3c1   :  { %v1323_v28 = vadd.f32 %v1322_v62, %v1321_v61 }
 0x3c2   :  { %v1258_v15 = vpop.permute.xlu1 %1257 }
 0x3c3   :  { %v1337_v55 = vpack.c.bf16 %v1323_v28, %v1323_v28  ;;  %v1274_v56 = vmul.f32 %v1258_v15, %v293_v36 }
 0x3c5   :  { %v1373_v6 = vunpack.c.l.b16 %v1337_v55  ;;  %v1324_v8 = vadd.f32 %v1274_v56, %v1273_v4 }
 0x3c7   :  { %v1325_v13 = vrot.slane %v1324_v8, 4  ;;  %v1386_v40 = vsel %vm1385_vm15, %v1373_v6, %v1384_v63 }
 0x3c9   :  { %v1326_v34 = vadd.f32 %v1325_v13, %v1324_v8 }
 0x3cb   :  { %v1327_v11 = vrot.slane %v1326_v34, 2 }
 0x3cd   :  { %v1328_v9 = vadd.f32 %v1327_v11, %v1326_v34 }
 0x3cf   :  { %v1329_v7 = vrot.slane %v1328_v9, 1 }
 0x3d1   :  { %v1330_v14 = vadd.f32 %v1329_v7, %v1328_v9 }
 0x3d3   :  { %v1338_v16 = vpack.c.bf16 %v1330_v14, %v1330_v14 }
 0x3d5   :  { %v1374_v47 = vunpack.c.l.b16 %v1338_v16 }
 0x3d7   :  { %v1388_v17 = vsel %vm1387_vm0, %v1374_v47, %v1386_v40 }
 0x3d8   :  { %v1389_v49 = vpack.c.b16 %v1388_v17, %v1388_v17 }
 0x3da   :  { %1447 = vmatmul.bf16.vlgmr.msrb.gmra.mxu0 %v1389_v49 }
 0x457   :  { %v1448_v19 = vpop.f32.mrf.mxu0 }
 0x458   :  { %v1449_v18 = vadd.f32 %v1555_v48, %v1448_v19 }
 0x45a   :  { %1452 = vst [vmem:[#allocation2] sm:$0xff] %v1449_v18 }
 0x45b   :  { %1463 = dma.vmem_to_hbm [thread:$0]  %s1459_s23, 128, %s1461_s26, [#allocation3]  }
 0x45f   :  { %v1450_v46 = vpop.f32.mrf.mxu0 }
 0x460   :  { %1645 = dma.done.wait [#allocation3], 128  }
 0x461   :  { %1646 = vsyncadd [#allocation3], 4294967168 }
 0x462   :  { %1468 = vsyncpa [#allocation3], 1 }

</bundles_post_ra>
